<compile_context>
chip_gen: v7x
topology: tpu7x:2x2x1
jax: 0.10.0
libtpu: 0.0.40
codegen_flags: <defaults>
</compile_context>

<pallas_src>
import functools

import numpy as np
import jax
import jax.numpy as jnp
from jax.experimental import pallas as pl
from jax.experimental.pallas import tpu as pltpu

BN_EPS = 1e-5
CONV_CFG = [(5, 2, 2), (5, 2, 2), (5, 2, 2), (2, 2, 0)]   # (kernel, stride, pad) per conv layer


# ----------------------------- fused Pallas kernel ----------------------------- #

def _fused_encoder_kernel(x_ref,
                          s1_ref, m1_ref, s2_ref, m2_ref,
                          s3_ref, m3_ref, s4_ref, m4_ref,
                          g_ref, p_ref, sf_ref, wl_ref, bl_ref,
                          o_ref, *, meta):
    """Whole CNNEncoder forward in one kernel; every intermediate stays on-chip.

    Activation layout: X[b*H + h, w*C + c].  Per conv layer:
        y = sum_i (S_i @ X) @ M_i     # stride + padding folded into S_i / M_i
        y = relu(y + bias_row)
        y = BN_train(y)               # one-pass stats, channel reduce via G matmul
    Final NCHW-flatten + Linear are folded into matmuls with host-permuted weights.
    """
    h = x_ref[...]
    layer_refs = ((s1_ref, m1_ref), (s2_ref, m2_ref), (s3_ref, m3_ref), (s4_ref, m4_ref))
    for l, ((s_ref, m_ref), (nk, inv_n)) in enumerate(zip(layer_refs, meta)):
        acc = None
        for i in range(nk):                              # static unroll over kernel-row offsets
            rows = jnp.dot(s_ref[i], h, preferred_element_type=jnp.float32)
            term = jnp.dot(rows, m_ref[i], preferred_element_type=jnp.float32)
            acc = term if acc is None else acc + term
        prm = p_ref[l]                                   # (3, OW*OC): bias / gamma / beta rows
        y = jnp.maximum(acc + prm[0:1, :], 0.0)          # conv bias + ReLU
        # Training-mode BN: one-pass sums, per-channel reduce+broadcast via one matmul.
        stats = jnp.concatenate(
            [jnp.sum(y, axis=0, keepdims=True),
             jnp.sum(y * y, axis=0, keepdims=True)], axis=0)        # (2, OW*OC)
        sg = jnp.dot(stats, g_ref[l], preferred_element_type=jnp.float32)
        mean = sg[0:1, :] * inv_n
        var = sg[1:2, :] * inv_n - mean * mean           # biased variance (torch training BN)
        h = (y - mean) * jax.lax.rsqrt(var + BN_EPS) * prm[1:2, :] + prm[2:3, :]

    # nn.Flatten (NCHW order) + nn.Linear, as matmuls with host-permuted weights.
    acc = None
    for hh in range(sf_ref.shape[0]):
        rows = jnp.dot(sf_ref[hh], h, preferred_element_type=jnp.float32)     # (B, Wf*C)
        term = jnp.dot(rows, wl_ref[hh], preferred_element_type=jnp.float32)  # (B, K)
        acc = term if acc is None else acc + term
    o_ref[...] = acc + bl_ref[...]


# ----------------------- one-time host-side operand prep ----------------------- #

def _row_select(B, H, OH, k, stride, pad):
    """S[i, b*OH+oh, b*H+y] = 1 iff y == stride*oh + i - pad is a valid input row."""
    S = np.zeros((k, B * OH, B * H), dtype=np.float32)
    for i in range(k):
        for b in range(B):
            for oh in range(OH):
                y = stride * oh + i - pad
                if 0 <= y < H:
                    S[i, b * OH + oh, b * H + y] = 1.0
    return S


def _col_place(W, OW, k, stride, pad):
    """P[j, w, ow] = 1 iff w == stride*ow + j - pad is a valid input column."""
    P = np.zeros((k, W, OW), dtype=np.float32)
    for j in range(k):
        for ow in range(OW):
            w = stride * ow + j - pad
            if 0 <= w < W:
                P[j, w, ow] = 1.0
    return P


def _group_sum(OW, OC):
    """G[(ow,c), (ow2,c2)] = (c == c2): per-channel sum over ow, broadcast back."""
    return np.kron(np.ones((OW, OW), np.float32), np.eye(OC, dtype=np.float32))


def _expand_weight(w_oihw, P):
    """M[i, w*Cin+c, ow*OC+oc] = W[oc, c, i, j] with j = w - stride*ow + pad (0 off-band)."""
    kh = w_oihw.shape[2]
    wt = jnp.transpose(w_oihw, (2, 3, 1, 0))                   # (kh, kw, Cin, OC)
    p = jnp.asarray(P)                                         # (kw, W, OW)
    # exact placement (single nonzero per slot) -> elementwise mult + sum, no matmul rounding
    m = (wt[:, :, None, None, :, :] * p[None, :, :, :, None, None]).sum(axis=1)
    m = jnp.transpose(m, (0, 1, 3, 2, 4))                      # (kh, W, Cin, OW, OC)
    _, W, Cin, OW, OC = m.shape
    return m.reshape(kh, W * Cin, OW * OC)


def _flatten_select(B, Hf):
    Sf = np.zeros((Hf, B, B * Hf), np.float32)
    for h in range(Hf):
        for b in range(B):
            Sf[h, b, b * Hf + h] = 1.0
    return Sf


def _permute_linear(w_lin, Hf, Wf, C):
    """WLp[h, w*C+c, k] = w_lin[k, c*Hf*Wf + h*Wf + w]  (PyTorch NCHW flatten order)."""
    K = w_lin.shape[0]
    w4 = w_lin.reshape(K, C, Hf, Wf)
    return jnp.transpose(w4, (2, 3, 1, 0)).reshape(Hf, Wf * C, K)


def prepare_encoder_inputs(conv_params, lin_params, img_size, batch):
    """Transform PyTorch-layout parameters into the fused-kernel operand set (done once)."""
    B = batch
    H = W = img_size
    Cin = conv_params[0]["w"].shape[1]
    per_layer_sm, g_list, prm_list, meta = [], [], [], []
    owoc = None
    for p, (k, s, pad) in zip(conv_params, CONV_CFG):
        OC = p["w"].shape[0]
        OH = (H + 2 * pad - k) // s + 1
        OW = (W + 2 * pad - k) // s + 1
        S = _row_select(B, H, OH, k, s, pad)
        P = _col_place(W, OW, k, s, pad)
        M = _expand_weight(p["w"], P)
        G = _group_sum(OW, OC)
        prm = jnp.stack([jnp.tile(p["b"], OW),
                         jnp.tile(p["gamma"], OW),
                         jnp.tile(p["beta"], OW)], axis=0)       # (3, OW*OC)
        if owoc is None:
            owoc = OW * OC
        assert OW * OC == owoc, "per-layer feature width must be constant for this arch"
        per_layer_sm += [jnp.asarray(S), M]
        g_list.append(G)
        prm_list.append(prm)
        meta.append((k, 1.0 / float(B * OH * OW)))
        H, W, Cin = OH, OW, OC

    Hf, Wf, C4 = H, W, Cin
    w_lin, b_lin = lin_params
    K = w_lin.shape[0]
    assert Hf * Wf * C4 == w_lin.shape[1], "Linear in-features mismatch"
    sf = jnp.asarray(_flatten_select(B, Hf))                     # (Hf, B, B*Hf)
    wlp = _permute_linear(w_lin, Hf, Wf, C4)                     # (Hf, Wf*C4, K)
    operands = tuple(per_layer_sm) + (
        jnp.asarray(np.stack(g_list)),                           # (4, OWOC, OWOC)
        jnp.stack(prm_list),                                     # (4, 3, OWOC)
        sf, wlp, b_lin.reshape(1, K))
    return operands, tuple(meta), K


def make_fused_forward(meta, batch, out_dim):
    kernel = functools.partial(_fused_encoder_kernel, meta=meta)

    @jax.jit
    def fwd(x2d, operands):
        n_in = 1 + len(operands)
        return pl.pallas_call(
            kernel,
            out_shape=jax.ShapeDtypeStruct((batch, out_dim), jnp.float32),
            in_specs=[pl.BlockSpec(memory_space=pltpu.MemorySpace.VMEM)] * n_in,
            out_specs=pl.BlockSpec(memory_space=pltpu.MemorySpace.VMEM),
        )(x2d, *operands)

    return fwd


def cnn_encoder_forward(x, fwd, operands, img_size, out_dim):
    """x: (S, M, N, D) with N = img_size**2  ->  (S, M, K)."""
    S, M, N, D = x.shape
    B = S * M
    # 's m (h w) d -> (s m) h w d' then pack to rows=(b,h), cols=(w,d): pure reshape.
    x2d = x.reshape(B * img_size, img_size * D)
    out = fwd(x2d, operands)
    return out.reshape(S, M, out_dim)


# --------------------------- params & pure-JAX reference ----------------------- #

def init_params(key, D, C, K, n_feat):
    """Deterministic synthetic parameters with PyTorch-native shapes."""
    layer_defs = [(D, C, 5), (C, 2 * C, 5), (2 * C, 4 * C, 5), (4 * C, 8 * C, 2)]
    conv_params = []
    for (ic, oc, k) in layer_defs:
        key, k1, k2, k3, k4 = jax.random.split(key, 5)
        bound = 1.0 / (ic * k * k) ** 0.5
        conv_params.append(dict(
            w=jax.random.uniform(k1, (oc, ic, k, k), jnp.float32, -bound, bound),
            b=jax.random.uniform(k2, (oc,), jnp.float32, -bound, bound),
            gamma=jax.random.uniform(k3, (oc,), jnp.float32, 0.5, 1.5),
            beta=jax.random.uniform(k4, (oc,), jnp.float32, -0.5, 0.5),
        ))
    key, k1, k2 = jax.random.split(key, 3)
    bound = 1.0 / n_feat ** 0.5
    w_lin = jax.random.uniform(k1, (K, n_feat), jnp.float32, -bound, bound)
    b_lin = jax.random.uniform(k2, (K,), jnp.float32, -bound, bound)
    return conv_params, (w_lin, b_lin)


def reference_forward(x, conv_params, lin_params, img_size):
    """Pure-JAX NCHW reference mirroring the PyTorch module (training-mode BN)."""
    S, M, N, D = x.shape
    B = S * M
    h = jnp.transpose(x.reshape(B, img_size, img_size, D), (0, 3, 1, 2))
    for p, (k, s, pad) in zip(conv_params, CONV_CFG):
        h = jax.lax.conv_general_dilated(
            h, p["w"], (s, s), [(pad, pad), (pad, pad)],
            dimension_numbers=("NCHW", "OIHW", "NCHW"))
        h = h + p["b"][None, :, None, None]
        h = jnp.maximum(h, 0.0)
        mean = jnp.mean(h, axis=(0, 2, 3), keepdims=True)
        var = jnp.mean((h - mean) ** 2, axis=(0, 2, 3), keepdims=True)
        h = ((h - mean) / jnp.sqrt(var + BN_EPS)
             * p["gamma"][None, :, None, None] + p["beta"][None, :, None, None])
    flat = h.reshape(B, -1)
    w_lin, b_lin = lin_params
    return (flat @ w_lin.T + b_lin).reshape(S, M, -1)


# -------------------------------------- main ----------------------------------- #

if __name__ == "__main__":
    # Small config: K=8, N=256 (img_size=16), D=3, n_channels=4  ->  B = S*M = 4.
    S, M, D, C, K = 2, 2, 3, 4, 8
    img_size = 16
    N = img_size * img_size
    n_feat = (img_size // 16) ** 2 * (8 * C)          # = 32

    key = jax.random.PRNGKey(0)
    key, kx, kp = jax.random.split(key, 3)
    x = jax.random.normal(kx, (S, M, N, D), dtype=jnp.float32)
    conv_params, lin_params = init_params(kp, D, C, K, n_feat)

    B = S * M
    operands, meta, out_k = prepare_encoder_inputs(conv_params, lin_params, img_size, B)
    fwd = make_fused_forward(meta, B, out_k)

    # BatchNorm2d is reproduced in training mode (batch statistics, biased variance),
    # matching the default state of a freshly-constructed PyTorch module.
    out = cnn_encoder_forward(x, fwd, operands, img_size, out_k)
    out = jax.block_until_ready(out)

    ref = reference_forward(x, conv_params, lin_params, img_size)
    assert out.shape == (S, M, K), out.shape
    max_err = float(jnp.max(jnp.abs(out - ref)))
    assert jnp.allclose(out, ref, atol=1e-4, rtol=1e-4), f"max_err={max_err}"
    print("KERNEL_OK")
</pallas_src>

<mosaic_0001>
module attributes {stable_mosaic.version = 11 : i64} {
  func.func @_fused_encoder_kernel(%arg0: memref<64x48xf32, #tpu.memory_space<vmem>>, %arg1: memref<5x32x64xf32, #tpu.memory_space<vmem>>, %arg2: memref<5x48x32xf32, #tpu.memory_space<vmem>>, %arg3: memref<5x16x32xf32, #tpu.memory_space<vmem>>, %arg4: memref<5x32x32xf32, #tpu.memory_space<vmem>>, %arg5: memref<5x8x16xf32, #tpu.memory_space<vmem>>, %arg6: memref<5x32x32xf32, #tpu.memory_space<vmem>>, %arg7: memref<2x4x8xf32, #tpu.memory_space<vmem>>, %arg8: memref<2x32x32xf32, #tpu.memory_space<vmem>>, %arg9: memref<4x32x32xf32, #tpu.memory_space<vmem>>, %arg10: memref<4x3x32xf32, #tpu.memory_space<vmem>>, %arg11: memref<1x4x4xf32, #tpu.memory_space<vmem>>, %arg12: memref<1x32x8xf32, #tpu.memory_space<vmem>>, %arg13: memref<1x8xf32, #tpu.memory_space<vmem>>, %arg14: memref<4x8xf32, #tpu.memory_space<vmem>>) attributes {dimension_semantics = [], scalar_prefetch = 0 : i64, scratch_operands = 0 : i64, tpu.core_type = #tpu.core_type<tc>} {
    %c0 = arith.constant 0 : index
    %c0_0 = arith.constant 0 : index
    %0 = vector.load %arg0[%c0, %c0_0] : memref<64x48xf32, #tpu.memory_space<vmem>>, vector<64x48xf32>
    %c0_1 = arith.constant 0 : index
    %c0_2 = arith.constant 0 : index
    %c0_3 = arith.constant 0 : index
    %1 = vector.load %arg1[%c0_1, %c0_2, %c0_3] : memref<5x32x64xf32, #tpu.memory_space<vmem>>, vector<1x32x64xf32>
    %2 = vector.shape_cast %1 : vector<1x32x64xf32> to vector<32x64xf32>
    %cst = arith.constant dense<0.000000e+00> : vector<32x48xf32>
    %3 = tpu.matmul %2, %0, %cst {dimension_numbers = #tpu.dot_dimension_numbers<[1], [0], [0], [1], [0, 0, 1, 1], [], []>} : vector<32x64xf32>, vector<64x48xf32>, vector<32x48xf32> -> vector<32x48xf32>
    %c0_4 = arith.constant 0 : index
    %c0_5 = arith.constant 0 : index
    %c0_6 = arith.constant 0 : index
    %4 = vector.load %arg2[%c0_4, %c0_5, %c0_6] : memref<5x48x32xf32, #tpu.memory_space<vmem>>, vector<1x48x32xf32>
    %5 = vector.shape_cast %4 : vector<1x48x32xf32> to vector<48x32xf32>
    %cst_7 = arith.constant dense<0.000000e+00> : vector<32x32xf32>
    %6 = tpu.matmul %3, %5, %cst_7 {dimension_numbers = #tpu.dot_dimension_numbers<[1], [0], [0], [1], [0, 0, 1, 1], [], []>} : vector<32x48xf32>, vector<48x32xf32>, vector<32x32xf32> -> vector<32x32xf32>
    %c1 = arith.constant 1 : index
    %c0_8 = arith.constant 0 : index
    %c0_9 = arith.constant 0 : index
    %7 = vector.load %arg1[%c1, %c0_8, %c0_9] : memref<5x32x64xf32, #tpu.memory_space<vmem>>, vector<1x32x64xf32>
    %8 = vector.shape_cast %7 : vector<1x32x64xf32> to vector<32x64xf32>
    %cst_10 = arith.constant dense<0.000000e+00> : vector<32x48xf32>
    %9 = tpu.matmul %8, %0, %cst_10 {dimension_numbers = #tpu.dot_dimension_numbers<[1], [0], [0], [1], [0, 0, 1, 1], [], []>} : vector<32x64xf32>, vector<64x48xf32>, vector<32x48xf32> -> vector<32x48xf32>
    %c1_11 = arith.constant 1 : index
    %c0_12 = arith.constant 0 : index
    %c0_13 = arith.constant 0 : index
    %10 = vector.load %arg2[%c1_11, %c0_12, %c0_13] : memref<5x48x32xf32, #tpu.memory_space<vmem>>, vector<1x48x32xf32>
    %11 = vector.shape_cast %10 : vector<1x48x32xf32> to vector<48x32xf32>
    %cst_14 = arith.constant dense<0.000000e+00> : vector<32x32xf32>
    %12 = tpu.matmul %9, %11, %cst_14 {dimension_numbers = #tpu.dot_dimension_numbers<[1], [0], [0], [1], [0, 0, 1, 1], [], []>} : vector<32x48xf32>, vector<48x32xf32>, vector<32x32xf32> -> vector<32x32xf32>
    %13 = arith.addf %6, %12 : vector<32x32xf32>
    %c2 = arith.constant 2 : index
    %c0_15 = arith.constant 0 : index
    %c0_16 = arith.constant 0 : index
    %14 = vector.load %arg1[%c2, %c0_15, %c0_16] : memref<5x32x64xf32, #tpu.memory_space<vmem>>, vector<1x32x64xf32>
    %15 = vector.shape_cast %14 : vector<1x32x64xf32> to vector<32x64xf32>
    %cst_17 = arith.constant dense<0.000000e+00> : vector<32x48xf32>
    %16 = tpu.matmul %15, %0, %cst_17 {dimension_numbers = #tpu.dot_dimension_numbers<[1], [0], [0], [1], [0, 0, 1, 1], [], []>} : vector<32x64xf32>, vector<64x48xf32>, vector<32x48xf32> -> vector<32x48xf32>
    %c2_18 = arith.constant 2 : index
    %c0_19 = arith.constant 0 : index
    %c0_20 = arith.constant 0 : index
    %17 = vector.load %arg2[%c2_18, %c0_19, %c0_20] : memref<5x48x32xf32, #tpu.memory_space<vmem>>, vector<1x48x32xf32>
    %18 = vector.shape_cast %17 : vector<1x48x32xf32> to vector<48x32xf32>
    %cst_21 = arith.constant dense<0.000000e+00> : vector<32x32xf32>
    %19 = tpu.matmul %16, %18, %cst_21 {dimension_numbers = #tpu.dot_dimension_numbers<[1], [0], [0], [1], [0, 0, 1, 1], [], []>} : vector<32x48xf32>, vector<48x32xf32>, vector<32x32xf32> -> vector<32x32xf32>
    %20 = arith.addf %13, %19 : vector<32x32xf32>
    %c3 = arith.constant 3 : index
    %c0_22 = arith.constant 0 : index
    %c0_23 = arith.constant 0 : index
    %21 = vector.load %arg1[%c3, %c0_22, %c0_23] : memref<5x32x64xf32, #tpu.memory_space<vmem>>, vector<1x32x64xf32>
    %22 = vector.shape_cast %21 : vector<1x32x64xf32> to vector<32x64xf32>
    %cst_24 = arith.constant dense<0.000000e+00> : vector<32x48xf32>
    %23 = tpu.matmul %22, %0, %cst_24 {dimension_numbers = #tpu.dot_dimension_numbers<[1], [0], [0], [1], [0, 0, 1, 1], [], []>} : vector<32x64xf32>, vector<64x48xf32>, vector<32x48xf32> -> vector<32x48xf32>
    %c3_25 = arith.constant 3 : index
    %c0_26 = arith.constant 0 : index
    %c0_27 = arith.constant 0 : index
    %24 = vector.load %arg2[%c3_25, %c0_26, %c0_27] : memref<5x48x32xf32, #tpu.memory_space<vmem>>, vector<1x48x32xf32>
    %25 = vector.shape_cast %24 : vector<1x48x32xf32> to vector<48x32xf32>
    %cst_28 = arith.constant dense<0.000000e+00> : vector<32x32xf32>
    %26 = tpu.matmul %23, %25, %cst_28 {dimension_numbers = #tpu.dot_dimension_numbers<[1], [0], [0], [1], [0, 0, 1, 1], [], []>} : vector<32x48xf32>, vector<48x32xf32>, vector<32x32xf32> -> vector<32x32xf32>
    %27 = arith.addf %20, %26 : vector<32x32xf32>
    %c4 = arith.constant 4 : index
    %c0_29 = arith.constant 0 : index
    %c0_30 = arith.constant 0 : index
    %28 = vector.load %arg1[%c4, %c0_29, %c0_30] : memref<5x32x64xf32, #tpu.memory_space<vmem>>, vector<1x32x64xf32>
    %29 = vector.shape_cast %28 : vector<1x32x64xf32> to vector<32x64xf32>
    %cst_31 = arith.constant dense<0.000000e+00> : vector<32x48xf32>
    %30 = tpu.matmul %29, %0, %cst_31 {dimension_numbers = #tpu.dot_dimension_numbers<[1], [0], [0], [1], [0, 0, 1, 1], [], []>} : vector<32x64xf32>, vector<64x48xf32>, vector<32x48xf32> -> vector<32x48xf32>
    %c4_32 = arith.constant 4 : index
    %c0_33 = arith.constant 0 : index
    %c0_34 = arith.constant 0 : index
    %31 = vector.load %arg2[%c4_32, %c0_33, %c0_34] : memref<5x48x32xf32, #tpu.memory_space<vmem>>, vector<1x48x32xf32>
    %32 = vector.shape_cast %31 : vector<1x48x32xf32> to vector<48x32xf32>
    %cst_35 = arith.constant dense<0.000000e+00> : vector<32x32xf32>
    %33 = tpu.matmul %30, %32, %cst_35 {dimension_numbers = #tpu.dot_dimension_numbers<[1], [0], [0], [1], [0, 0, 1, 1], [], []>} : vector<32x48xf32>, vector<48x32xf32>, vector<32x32xf32> -> vector<32x32xf32>
    %34 = arith.addf %27, %33 : vector<32x32xf32>
    %c0_36 = arith.constant 0 : index
    %c0_37 = arith.constant 0 : index
    %c0_38 = arith.constant 0 : index
    %35 = vector.load %arg10[%c0_36, %c0_37, %c0_38] : memref<4x3x32xf32, #tpu.memory_space<vmem>>, vector<1x3x32xf32>
    %36 = vector.shape_cast %35 : vector<1x3x32xf32> to vector<3x32xf32>
    %37 = vector.extract_strided_slice %36 {offsets = [0, 0], sizes = [1, 32], strides = [1, 1]} : vector<3x32xf32> to vector<1x32xf32>
    %38 = vector.broadcast %37 : vector<1x32xf32> to vector<32x32xf32>
    %39 = arith.addf %34, %38 : vector<32x32xf32>
    %cst_39 = arith.constant 0.000000e+00 : f32
    %40 = vector.broadcast %cst_39 : f32 to vector<32x32xf32>
    %41 = arith.maximumf %39, %40 : vector<32x32xf32>
    %cst_40 = arith.constant dense<0.000000e+00> : vector<32xf32>
    %42 = vector.multi_reduction <add>, %41, %cst_40 [0] : vector<32x32xf32> to vector<32xf32>
    %43 = vector.shape_cast %42 : vector<32xf32> to vector<1x32xf32>
    %44 = arith.mulf %41, %41 : vector<32x32xf32>
    %cst_41 = arith.constant dense<0.000000e+00> : vector<32xf32>
    %45 = vector.multi_reduction <add>, %44, %cst_41 [0] : vector<32x32xf32> to vector<32xf32>
    %46 = vector.shape_cast %45 : vector<32xf32> to vector<1x32xf32>
    %47 = tpu.concatenate %43, %46 in 0 : vector<1x32xf32>, vector<1x32xf32> -> vector<2x32xf32>
    %c0_42 = arith.constant 0 : index
    %c0_43 = arith.constant 0 : index
    %c0_44 = arith.constant 0 : index
    %48 = vector.load %arg9[%c0_42, %c0_43, %c0_44] : memref<4x32x32xf32, #tpu.memory_space<vmem>>, vector<1x32x32xf32>
    %49 = vector.shape_cast %48 : vector<1x32x32xf32> to vector<32x32xf32>
    %cst_45 = arith.constant dense<0.000000e+00> : vector<2x32xf32>
    %50 = tpu.matmul %47, %49, %cst_45 {dimension_numbers = #tpu.dot_dimension_numbers<[1], [0], [0], [1], [0, 0, 1, 1], [], []>} : vector<2x32xf32>, vector<32x32xf32>, vector<2x32xf32> -> vector<2x32xf32>
    %51 = vector.extract_strided_slice %50 {offsets = [0, 0], sizes = [1, 32], strides = [1, 1]} : vector<2x32xf32> to vector<1x32xf32>
    %cst_46 = arith.constant 3.906250e-03 : f32
    %52 = vector.broadcast %cst_46 : f32 to vector<1x32xf32>
    %53 = arith.mulf %51, %52 : vector<1x32xf32>
    %54 = vector.extract_strided_slice %50 {offsets = [1, 0], sizes = [1, 32], strides = [1, 1]} : vector<2x32xf32> to vector<1x32xf32>
    %cst_47 = arith.constant 3.906250e-03 : f32
    %55 = vector.broadcast %cst_47 : f32 to vector<1x32xf32>
    %56 = arith.mulf %54, %55 : vector<1x32xf32>
    %57 = arith.mulf %53, %53 : vector<1x32xf32>
    %58 = arith.subf %56, %57 : vector<1x32xf32>
    %59 = vector.broadcast %53 : vector<1x32xf32> to vector<32x32xf32>
    %60 = arith.subf %41, %59 : vector<32x32xf32>
    %cst_48 = arith.constant 9.99999974E-6 : f32
    %61 = vector.broadcast %cst_48 : f32 to vector<1x32xf32>
    %62 = arith.addf %58, %61 : vector<1x32xf32>
    %63 = math.rsqrt %62 : vector<1x32xf32>
    %64 = vector.broadcast %63 : vector<1x32xf32> to vector<32x32xf32>
    %65 = arith.mulf %60, %64 : vector<32x32xf32>
    %66 = vector.extract_strided_slice %36 {offsets = [1, 0], sizes = [1, 32], strides = [1, 1]} : vector<3x32xf32> to vector<1x32xf32>
    %67 = vector.broadcast %66 : vector<1x32xf32> to vector<32x32xf32>
    %68 = arith.mulf %65, %67 : vector<32x32xf32>
    %69 = vector.extract_strided_slice %36 {offsets = [2, 0], sizes = [1, 32], strides = [1, 1]} : vector<3x32xf32> to vector<1x32xf32>
    %70 = vector.broadcast %69 : vector<1x32xf32> to vector<32x32xf32>
    %71 = arith.addf %68, %70 : vector<32x32xf32>
    %c0_49 = arith.constant 0 : index
    %c0_50 = arith.constant 0 : index
    %c0_51 = arith.constant 0 : index
    %72 = vector.load %arg3[%c0_49, %c0_50, %c0_51] : memref<5x16x32xf32, #tpu.memory_space<vmem>>, vector<1x16x32xf32>
    %73 = vector.shape_cast %72 : vector<1x16x32xf32> to vector<16x32xf32>
    %cst_52 = arith.constant dense<0.000000e+00> : vector<16x32xf32>
    %74 = tpu.matmul %73, %71, %cst_52 {dimension_numbers = #tpu.dot_dimension_numbers<[1], [0], [0], [1], [0, 0, 1, 1], [], []>} : vector<16x32xf32>, vector<32x32xf32>, vector<16x32xf32> -> vector<16x32xf32>
    %c0_53 = arith.constant 0 : index
    %c0_54 = arith.constant 0 : index
    %c0_55 = arith.constant 0 : index
    %75 = vector.load %arg4[%c0_53, %c0_54, %c0_55] : memref<5x32x32xf32, #tpu.memory_space<vmem>>, vector<1x32x32xf32>
    %76 = vector.shape_cast %75 : vector<1x32x32xf32> to vector<32x32xf32>
    %cst_56 = arith.constant dense<0.000000e+00> : vector<16x32xf32>
    %77 = tpu.matmul %74, %76, %cst_56 {dimension_numbers = #tpu.dot_dimension_numbers<[1], [0], [0], [1], [0, 0, 1, 1], [], []>} : vector<16x32xf32>, vector<32x32xf32>, vector<16x32xf32> -> vector<16x32xf32>
    %c1_57 = arith.constant 1 : index
    %c0_58 = arith.constant 0 : index
    %c0_59 = arith.constant 0 : index
    %78 = vector.load %arg3[%c1_57, %c0_58, %c0_59] : memref<5x16x32xf32, #tpu.memory_space<vmem>>, vector<1x16x32xf32>
    %79 = vector.shape_cast %78 : vector<1x16x32xf32> to vector<16x32xf32>
    %cst_60 = arith.constant dense<0.000000e+00> : vector<16x32xf32>
    %80 = tpu.matmul %79, %71, %cst_60 {dimension_numbers = #tpu.dot_dimension_numbers<[1], [0], [0], [1], [0, 0, 1, 1], [], []>} : vector<16x32xf32>, vector<32x32xf32>, vector<16x32xf32> -> vector<16x32xf32>
    %c1_61 = arith.constant 1 : index
    %c0_62 = arith.constant 0 : index
    %c0_63 = arith.constant 0 : index
    %81 = vector.load %arg4[%c1_61, %c0_62, %c0_63] : memref<5x32x32xf32, #tpu.memory_space<vmem>>, vector<1x32x32xf32>
    %82 = vector.shape_cast %81 : vector<1x32x32xf32> to vector<32x32xf32>
    %cst_64 = arith.constant dense<0.000000e+00> : vector<16x32xf32>
    %83 = tpu.matmul %80, %82, %cst_64 {dimension_numbers = #tpu.dot_dimension_numbers<[1], [0], [0], [1], [0, 0, 1, 1], [], []>} : vector<16x32xf32>, vector<32x32xf32>, vector<16x32xf32> -> vector<16x32xf32>
    %84 = arith.addf %77, %83 : vector<16x32xf32>
    %c2_65 = arith.constant 2 : index
    %c0_66 = arith.constant 0 : index
    %c0_67 = arith.constant 0 : index
    %85 = vector.load %arg3[%c2_65, %c0_66, %c0_67] : memref<5x16x32xf32, #tpu.memory_space<vmem>>, vector<1x16x32xf32>
    %86 = vector.shape_cast %85 : vector<1x16x32xf32> to vector<16x32xf32>
    %cst_68 = arith.constant dense<0.000000e+00> : vector<16x32xf32>
    %87 = tpu.matmul %86, %71, %cst_68 {dimension_numbers = #tpu.dot_dimension_numbers<[1], [0], [0], [1], [0, 0, 1, 1], [], []>} : vector<16x32xf32>, vector<32x32xf32>, vector<16x32xf32> -> vector<16x32xf32>
    %c2_69 = arith.constant 2 : index
    %c0_70 = arith.constant 0 : index
    %c0_71 = arith.constant 0 : index
    %88 = vector.load %arg4[%c2_69, %c0_70, %c0_71] : memref<5x32x32xf32, #tpu.memory_space<vmem>>, vector<1x32x32xf32>
    %89 = vector.shape_cast %88 : vector<1x32x32xf32> to vector<32x32xf32>
    %cst_72 = arith.constant dense<0.000000e+00> : vector<16x32xf32>
    %90 = tpu.matmul %87, %89, %cst_72 {dimension_numbers = #tpu.dot_dimension_numbers<[1], [0], [0], [1], [0, 0, 1, 1], [], []>} : vector<16x32xf32>, vector<32x32xf32>, vector<16x32xf32> -> vector<16x32xf32>
    %91 = arith.addf %84, %90 : vector<16x32xf32>
    %c3_73 = arith.constant 3 : index
    %c0_74 = arith.constant 0 : index
    %c0_75 = arith.constant 0 : index
    %92 = vector.load %arg3[%c3_73, %c0_74, %c0_75] : memref<5x16x32xf32, #tpu.memory_space<vmem>>, vector<1x16x32xf32>
    %93 = vector.shape_cast %92 : vector<1x16x32xf32> to vector<16x32xf32>
    %cst_76 = arith.constant dense<0.000000e+00> : vector<16x32xf32>
    %94 = tpu.matmul %93, %71, %cst_76 {dimension_numbers = #tpu.dot_dimension_numbers<[1], [0], [0], [1], [0, 0, 1, 1], [], []>} : vector<16x32xf32>, vector<32x32xf32>, vector<16x32xf32> -> vector<16x32xf32>
    %c3_77 = arith.constant 3 : index
    %c0_78 = arith.constant 0 : index
    %c0_79 = arith.constant 0 : index
    %95 = vector.load %arg4[%c3_77, %c0_78, %c0_79] : memref<5x32x32xf32, #tpu.memory_space<vmem>>, vector<1x32x32xf32>
    %96 = vector.shape_cast %95 : vector<1x32x32xf32> to vector<32x32xf32>
    %cst_80 = arith.constant dense<0.000000e+00> : vector<16x32xf32>
    %97 = tpu.matmul %94, %96, %cst_80 {dimension_numbers = #tpu.dot_dimension_numbers<[1], [0], [0], [1], [0, 0, 1, 1], [], []>} : vector<16x32xf32>, vector<32x32xf32>, vector<16x32xf32> -> vector<16x32xf32>
    %98 = arith.addf %91, %97 : vector<16x32xf32>
    %c4_81 = arith.constant 4 : index
    %c0_82 = arith.constant 0 : index
    %c0_83 = arith.constant 0 : index
    %99 = vector.load %arg3[%c4_81, %c0_82, %c0_83] : memref<5x16x32xf32, #tpu.memory_space<vmem>>, vector<1x16x32xf32>
    %100 = vector.shape_cast %99 : vector<1x16x32xf32> to vector<16x32xf32>
    %cst_84 = arith.constant dense<0.000000e+00> : vector<16x32xf32>
    %101 = tpu.matmul %100, %71, %cst_84 {dimension_numbers = #tpu.dot_dimension_numbers<[1], [0], [0], [1], [0, 0, 1, 1], [], []>} : vector<16x32xf32>, vector<32x32xf32>, vector<16x32xf32> -> vector<16x32xf32>
    %c4_85 = arith.constant 4 : index
    %c0_86 = arith.constant 0 : index
    %c0_87 = arith.constant 0 : index
    %102 = vector.load %arg4[%c4_85, %c0_86, %c0_87] : memref<5x32x32xf32, #tpu.memory_space<vmem>>, vector<1x32x32xf32>
    %103 = vector.shape_cast %102 : vector<1x32x32xf32> to vector<32x32xf32>
    %cst_88 = arith.constant dense<0.000000e+00> : vector<16x32xf32>
    %104 = tpu.matmul %101, %103, %cst_88 {dimension_numbers = #tpu.dot_dimension_numbers<[1], [0], [0], [1], [0, 0, 1, 1], [], []>} : vector<16x32xf32>, vector<32x32xf32>, vector<16x32xf32> -> vector<16x32xf32>
    %105 = arith.addf %98, %104 : vector<16x32xf32>
    %c1_89 = arith.constant 1 : index
    %c0_90 = arith.constant 0 : index
    %c0_91 = arith.constant 0 : index
    %106 = vector.load %arg10[%c1_89, %c0_90, %c0_91] : memref<4x3x32xf32, #tpu.memory_space<vmem>>, vector<1x3x32xf32>
    %107 = vector.shape_cast %106 : vector<1x3x32xf32> to vector<3x32xf32>
    %108 = vector.extract_strided_slice %107 {offsets = [0, 0], sizes = [1, 32], strides = [1, 1]} : vector<3x32xf32> to vector<1x32xf32>
    %109 = vector.broadcast %108 : vector<1x32xf32> to vector<16x32xf32>
    %110 = arith.addf %105, %109 : vector<16x32xf32>
    %cst_92 = arith.constant 0.000000e+00 : f32
    %111 = vector.broadcast %cst_92 : f32 to vector<16x32xf32>
    %112 = arith.maximumf %110, %111 : vector<16x32xf32>
    %cst_93 = arith.constant dense<0.000000e+00> : vector<32xf32>
    %113 = vector.multi_reduction <add>, %112, %cst_93 [0] : vector<16x32xf32> to vector<32xf32>
    %114 = vector.shape_cast %113 : vector<32xf32> to vector<1x32xf32>
    %115 = arith.mulf %112, %112 : vector<16x32xf32>
    %cst_94 = arith.constant dense<0.000000e+00> : vector<32xf32>
    %116 = vector.multi_reduction <add>, %115, %cst_94 [0] : vector<16x32xf32> to vector<32xf32>
    %117 = vector.shape_cast %116 : vector<32xf32> to vector<1x32xf32>
    %118 = tpu.concatenate %114, %117 in 0 : vector<1x32xf32>, vector<1x32xf32> -> vector<2x32xf32>
    %c1_95 = arith.constant 1 : index
    %c0_96 = arith.constant 0 : index
    %c0_97 = arith.constant 0 : index
    %119 = vector.load %arg9[%c1_95, %c0_96, %c0_97] : memref<4x32x32xf32, #tpu.memory_space<vmem>>, vector<1x32x32xf32>
    %120 = vector.shape_cast %119 : vector<1x32x32xf32> to vector<32x32xf32>
    %cst_98 = arith.constant dense<0.000000e+00> : vector<2x32xf32>
    %121 = tpu.matmul %118, %120, %cst_98 {dimension_numbers = #tpu.dot_dimension_numbers<[1], [0], [0], [1], [0, 0, 1, 1], [], []>} : vector<2x32xf32>, vector<32x32xf32>, vector<2x32xf32> -> vector<2x32xf32>
    %122 = vector.extract_strided_slice %121 {offsets = [0, 0], sizes = [1, 32], strides = [1, 1]} : vector<2x32xf32> to vector<1x32xf32>
    %cst_99 = arith.constant 1.562500e-02 : f32
    %123 = vector.broadcast %cst_99 : f32 to vector<1x32xf32>
    %124 = arith.mulf %122, %123 : vector<1x32xf32>
    %125 = vector.extract_strided_slice %121 {offsets = [1, 0], sizes = [1, 32], strides = [1, 1]} : vector<2x32xf32> to vector<1x32xf32>
    %cst_100 = arith.constant 1.562500e-02 : f32
    %126 = vector.broadcast %cst_100 : f32 to vector<1x32xf32>
    %127 = arith.mulf %125, %126 : vector<1x32xf32>
    %128 = arith.mulf %124, %124 : vector<1x32xf32>
    %129 = arith.subf %127, %128 : vector<1x32xf32>
    %130 = vector.broadcast %124 : vector<1x32xf32> to vector<16x32xf32>
    %131 = arith.subf %112, %130 : vector<16x32xf32>
    %cst_101 = arith.constant 9.99999974E-6 : f32
    %132 = vector.broadcast %cst_101 : f32 to vector<1x32xf32>
    %133 = arith.addf %129, %132 : vector<1x32xf32>
    %134 = math.rsqrt %133 : vector<1x32xf32>
    %135 = vector.broadcast %134 : vector<1x32xf32> to vector<16x32xf32>
    %136 = arith.mulf %131, %135 : vector<16x32xf32>
    %137 = vector.extract_strided_slice %107 {offsets = [1, 0], sizes = [1, 32], strides = [1, 1]} : vector<3x32xf32> to vector<1x32xf32>
    %138 = vector.broadcast %137 : vector<1x32xf32> to vector<16x32xf32>
    %139 = arith.mulf %136, %138 : vector<16x32xf32>
    %140 = vector.extract_strided_slice %107 {offsets = [2, 0], sizes = [1, 32], strides = [1, 1]} : vector<3x32xf32> to vector<1x32xf32>
    %141 = vector.broadcast %140 : vector<1x32xf32> to vector<16x32xf32>
    %142 = arith.addf %139, %141 : vector<16x32xf32>
    %c0_102 = arith.constant 0 : index
    %c0_103 = arith.constant 0 : index
    %c0_104 = arith.constant 0 : index
    %143 = vector.load %arg5[%c0_102, %c0_103, %c0_104] : memref<5x8x16xf32, #tpu.memory_space<vmem>>, vector<1x8x16xf32>
    %144 = vector.shape_cast %143 : vector<1x8x16xf32> to vector<8x16xf32>
    %cst_105 = arith.constant dense<0.000000e+00> : vector<8x32xf32>
    %145 = tpu.matmul %144, %142, %cst_105 {dimension_numbers = #tpu.dot_dimension_numbers<[1], [0], [0], [1], [0, 0, 1, 1], [], []>} : vector<8x16xf32>, vector<16x32xf32>, vector<8x32xf32> -> vector<8x32xf32>
    %c0_106 = arith.constant 0 : index
    %c0_107 = arith.constant 0 : index
    %c0_108 = arith.constant 0 : index
    %146 = vector.load %arg6[%c0_106, %c0_107, %c0_108] : memref<5x32x32xf32, #tpu.memory_space<vmem>>, vector<1x32x32xf32>
    %147 = vector.shape_cast %146 : vector<1x32x32xf32> to vector<32x32xf32>
    %cst_109 = arith.constant dense<0.000000e+00> : vector<8x32xf32>
    %148 = tpu.matmul %145, %147, %cst_109 {dimension_numbers = #tpu.dot_dimension_numbers<[1], [0], [0], [1], [0, 0, 1, 1], [], []>} : vector<8x32xf32>, vector<32x32xf32>, vector<8x32xf32> -> vector<8x32xf32>
    %c1_110 = arith.constant 1 : index
    %c0_111 = arith.constant 0 : index
    %c0_112 = arith.constant 0 : index
    %149 = vector.load %arg5[%c1_110, %c0_111, %c0_112] : memref<5x8x16xf32, #tpu.memory_space<vmem>>, vector<1x8x16xf32>
    %150 = vector.shape_cast %149 : vector<1x8x16xf32> to vector<8x16xf32>
    %cst_113 = arith.constant dense<0.000000e+00> : vector<8x32xf32>
    %151 = tpu.matmul %150, %142, %cst_113 {dimension_numbers = #tpu.dot_dimension_numbers<[1], [0], [0], [1], [0, 0, 1, 1], [], []>} : vector<8x16xf32>, vector<16x32xf32>, vector<8x32xf32> -> vector<8x32xf32>
    %c1_114 = arith.constant 1 : index
    %c0_115 = arith.constant 0 : index
    %c0_116 = arith.constant 0 : index
    %152 = vector.load %arg6[%c1_114, %c0_115, %c0_116] : memref<5x32x32xf32, #tpu.memory_space<vmem>>, vector<1x32x32xf32>
    %153 = vector.shape_cast %152 : vector<1x32x32xf32> to vector<32x32xf32>
    %cst_117 = arith.constant dense<0.000000e+00> : vector<8x32xf32>
    %154 = tpu.matmul %151, %153, %cst_117 {dimension_numbers = #tpu.dot_dimension_numbers<[1], [0], [0], [1], [0, 0, 1, 1], [], []>} : vector<8x32xf32>, vector<32x32xf32>, vector<8x32xf32> -> vector<8x32xf32>
    %155 = arith.addf %148, %154 : vector<8x32xf32>
    %c2_118 = arith.constant 2 : index
    %c0_119 = arith.constant 0 : index
    %c0_120 = arith.constant 0 : index
    %156 = vector.load %arg5[%c2_118, %c0_119, %c0_120] : memref<5x8x16xf32, #tpu.memory_space<vmem>>, vector<1x8x16xf32>
    %157 = vector.shape_cast %156 : vector<1x8x16xf32> to vector<8x16xf32>
    %cst_121 = arith.constant dense<0.000000e+00> : vector<8x32xf32>
    %158 = tpu.matmul %157, %142, %cst_121 {dimension_numbers = #tpu.dot_dimension_numbers<[1], [0], [0], [1], [0, 0, 1, 1], [], []>} : vector<8x16xf32>, vector<16x32xf32>, vector<8x32xf32> -> vector<8x32xf32>
    %c2_122 = arith.constant 2 : index
    %c0_123 = arith.constant 0 : index
    %c0_124 = arith.constant 0 : index
    %159 = vector.load %arg6[%c2_122, %c0_123, %c0_124] : memref<5x32x32xf32, #tpu.memory_space<vmem>>, vector<1x32x32xf32>
    %160 = vector.shape_cast %159 : vector<1x32x32xf32> to vector<32x32xf32>
    %cst_125 = arith.constant dense<0.000000e+00> : vector<8x32xf32>
    %161 = tpu.matmul %158, %160, %cst_125 {dimension_numbers = #tpu.dot_dimension_numbers<[1], [0], [0], [1], [0, 0, 1, 1], [], []>} : vector<8x32xf32>, vector<32x32xf32>, vector<8x32xf32> -> vector<8x32xf32>
    %162 = arith.addf %155, %161 : vector<8x32xf32>
    %c3_126 = arith.constant 3 : index
    %c0_127 = arith.constant 0 : index
    %c0_128 = arith.constant 0 : index
    %163 = vector.load %arg5[%c3_126, %c0_127, %c0_128] : memref<5x8x16xf32, #tpu.memory_space<vmem>>, vector<1x8x16xf32>
    %164 = vector.shape_cast %163 : vector<1x8x16xf32> to vector<8x16xf32>
    %cst_129 = arith.constant dense<0.000000e+00> : vector<8x32xf32>
    %165 = tpu.matmul %164, %142, %cst_129 {dimension_numbers = #tpu.dot_dimension_numbers<[1], [0], [0], [1], [0, 0, 1, 1], [], []>} : vector<8x16xf32>, vector<16x32xf32>, vector<8x32xf32> -> vector<8x32xf32>
    %c3_130 = arith.constant 3 : index
    %c0_131 = arith.constant 0 : index
    %c0_132 = arith.constant 0 : index
    %166 = vector.load %arg6[%c3_130, %c0_131, %c0_132] : memref<5x32x32xf32, #tpu.memory_space<vmem>>, vector<1x32x32xf32>
    %167 = vector.shape_cast %166 : vector<1x32x32xf32> to vector<32x32xf32>
    %cst_133 = arith.constant dense<0.000000e+00> : vector<8x32xf32>
    %168 = tpu.matmul %165, %167, %cst_133 {dimension_numbers = #tpu.dot_dimension_numbers<[1], [0], [0], [1], [0, 0, 1, 1], [], []>} : vector<8x32xf32>, vector<32x32xf32>, vector<8x32xf32> -> vector<8x32xf32>
    %169 = arith.addf %162, %168 : vector<8x32xf32>
    %c4_134 = arith.constant 4 : index
    %c0_135 = arith.constant 0 : index
    %c0_136 = arith.constant 0 : index
    %170 = vector.load %arg5[%c4_134, %c0_135, %c0_136] : memref<5x8x16xf32, #tpu.memory_space<vmem>>, vector<1x8x16xf32>
    %171 = vector.shape_cast %170 : vector<1x8x16xf32> to vector<8x16xf32>
    %cst_137 = arith.constant dense<0.000000e+00> : vector<8x32xf32>
    %172 = tpu.matmul %171, %142, %cst_137 {dimension_numbers = #tpu.dot_dimension_numbers<[1], [0], [0], [1], [0, 0, 1, 1], [], []>} : vector<8x16xf32>, vector<16x32xf32>, vector<8x32xf32> -> vector<8x32xf32>
    %c4_138 = arith.constant 4 : index
    %c0_139 = arith.constant 0 : index
    %c0_140 = arith.constant 0 : index
    %173 = vector.load %arg6[%c4_138, %c0_139, %c0_140] : memref<5x32x32xf32, #tpu.memory_space<vmem>>, vector<1x32x32xf32>
    %174 = vector.shape_cast %173 : vector<1x32x32xf32> to vector<32x32xf32>
    %cst_141 = arith.constant dense<0.000000e+00> : vector<8x32xf32>
    %175 = tpu.matmul %172, %174, %cst_141 {dimension_numbers = #tpu.dot_dimension_numbers<[1], [0], [0], [1], [0, 0, 1, 1], [], []>} : vector<8x32xf32>, vector<32x32xf32>, vector<8x32xf32> -> vector<8x32xf32>
    %176 = arith.addf %169, %175 : vector<8x32xf32>
    %c2_142 = arith.constant 2 : index
    %c0_143 = arith.constant 0 : index
    %c0_144 = arith.constant 0 : index
    %177 = vector.load %arg10[%c2_142, %c0_143, %c0_144] : memref<4x3x32xf32, #tpu.memory_space<vmem>>, vector<1x3x32xf32>
    %178 = vector.shape_cast %177 : vector<1x3x32xf32> to vector<3x32xf32>
    %179 = vector.extract_strided_slice %178 {offsets = [0, 0], sizes = [1, 32], strides = [1, 1]} : vector<3x32xf32> to vector<1x32xf32>
    %180 = vector.broadcast %179 : vector<1x32xf32> to vector<8x32xf32>
    %181 = arith.addf %176, %180 : vector<8x32xf32>
    %cst_145 = arith.constant 0.000000e+00 : f32
    %182 = vector.broadcast %cst_145 : f32 to vector<8x32xf32>
    %183 = arith.maximumf %181, %182 : vector<8x32xf32>
    %cst_146 = arith.constant dense<0.000000e+00> : vector<32xf32>
    %184 = vector.multi_reduction <add>, %183, %cst_146 [0] : vector<8x32xf32> to vector<32xf32>
    %185 = vector.shape_cast %184 : vector<32xf32> to vector<1x32xf32>
    %186 = arith.mulf %183, %183 : vector<8x32xf32>
    %cst_147 = arith.constant dense<0.000000e+00> : vector<32xf32>
    %187 = vector.multi_reduction <add>, %186, %cst_147 [0] : vector<8x32xf32> to vector<32xf32>
    %188 = vector.shape_cast %187 : vector<32xf32> to vector<1x32xf32>
    %189 = tpu.concatenate %185, %188 in 0 : vector<1x32xf32>, vector<1x32xf32> -> vector<2x32xf32>
    %c2_148 = arith.constant 2 : index
    %c0_149 = arith.constant 0 : index
    %c0_150 = arith.constant 0 : index
    %190 = vector.load %arg9[%c2_148, %c0_149, %c0_150] : memref<4x32x32xf32, #tpu.memory_space<vmem>>, vector<1x32x32xf32>
    %191 = vector.shape_cast %190 : vector<1x32x32xf32> to vector<32x32xf32>
    %cst_151 = arith.constant dense<0.000000e+00> : vector<2x32xf32>
    %192 = tpu.matmul %189, %191, %cst_151 {dimension_numbers = #tpu.dot_dimension_numbers<[1], [0], [0], [1], [0, 0, 1, 1], [], []>} : vector<2x32xf32>, vector<32x32xf32>, vector<2x32xf32> -> vector<2x32xf32>
    %193 = vector.extract_strided_slice %192 {offsets = [0, 0], sizes = [1, 32], strides = [1, 1]} : vector<2x32xf32> to vector<1x32xf32>
    %cst_152 = arith.constant 6.250000e-02 : f32
    %194 = vector.broadcast %cst_152 : f32 to vector<1x32xf32>
    %195 = arith.mulf %193, %194 : vector<1x32xf32>
    %196 = vector.extract_strided_slice %192 {offsets = [1, 0], sizes = [1, 32], strides = [1, 1]} : vector<2x32xf32> to vector<1x32xf32>
    %cst_153 = arith.constant 6.250000e-02 : f32
    %197 = vector.broadcast %cst_153 : f32 to vector<1x32xf32>
    %198 = arith.mulf %196, %197 : vector<1x32xf32>
    %199 = arith.mulf %195, %195 : vector<1x32xf32>
    %200 = arith.subf %198, %199 : vector<1x32xf32>
    %201 = vector.broadcast %195 : vector<1x32xf32> to vector<8x32xf32>
    %202 = arith.subf %183, %201 : vector<8x32xf32>
    %cst_154 = arith.constant 9.99999974E-6 : f32
    %203 = vector.broadcast %cst_154 : f32 to vector<1x32xf32>
    %204 = arith.addf %200, %203 : vector<1x32xf32>
    %205 = math.rsqrt %204 : vector<1x32xf32>
    %206 = vector.broadcast %205 : vector<1x32xf32> to vector<8x32xf32>
    %207 = arith.mulf %202, %206 : vector<8x32xf32>
    %208 = vector.extract_strided_slice %178 {offsets = [1, 0], sizes = [1, 32], strides = [1, 1]} : vector<3x32xf32> to vector<1x32xf32>
    %209 = vector.broadcast %208 : vector<1x32xf32> to vector<8x32xf32>
    %210 = arith.mulf %207, %209 : vector<8x32xf32>
    %211 = vector.extract_strided_slice %178 {offsets = [2, 0], sizes = [1, 32], strides = [1, 1]} : vector<3x32xf32> to vector<1x32xf32>
    %212 = vector.broadcast %211 : vector<1x32xf32> to vector<8x32xf32>
    %213 = arith.addf %210, %212 : vector<8x32xf32>
    %c0_155 = arith.constant 0 : index
    %c0_156 = arith.constant 0 : index
    %c0_157 = arith.constant 0 : index
    %214 = vector.load %arg7[%c0_155, %c0_156, %c0_157] : memref<2x4x8xf32, #tpu.memory_space<vmem>>, vector<1x4x8xf32>
    %215 = vector.shape_cast %214 : vector<1x4x8xf32> to vector<4x8xf32>
    %cst_158 = arith.constant dense<0.000000e+00> : vector<4x32xf32>
    %216 = tpu.matmul %215, %213, %cst_158 {dimension_numbers = #tpu.dot_dimension_numbers<[1], [0], [0], [1], [0, 0, 1, 1], [], []>} : vector<4x8xf32>, vector<8x32xf32>, vector<4x32xf32> -> vector<4x32xf32>
    %c0_159 = arith.constant 0 : index
    %c0_160 = arith.constant 0 : index
    %c0_161 = arith.constant 0 : index
    %217 = vector.load %arg8[%c0_159, %c0_160, %c0_161] : memref<2x32x32xf32, #tpu.memory_space<vmem>>, vector<1x32x32xf32>
    %218 = vector.shape_cast %217 : vector<1x32x32xf32> to vector<32x32xf32>
    %cst_162 = arith.constant dense<0.000000e+00> : vector<4x32xf32>
    %219 = tpu.matmul %216, %218, %cst_162 {dimension_numbers = #tpu.dot_dimension_numbers<[1], [0], [0], [1], [0, 0, 1, 1], [], []>} : vector<4x32xf32>, vector<32x32xf32>, vector<4x32xf32> -> vector<4x32xf32>
    %c1_163 = arith.constant 1 : index
    %c0_164 = arith.constant 0 : index
    %c0_165 = arith.constant 0 : index
    %220 = vector.load %arg7[%c1_163, %c0_164, %c0_165] : memref<2x4x8xf32, #tpu.memory_space<vmem>>, vector<1x4x8xf32>
    %221 = vector.shape_cast %220 : vector<1x4x8xf32> to vector<4x8xf32>
    %cst_166 = arith.constant dense<0.000000e+00> : vector<4x32xf32>
    %222 = tpu.matmul %221, %213, %cst_166 {dimension_numbers = #tpu.dot_dimension_numbers<[1], [0], [0], [1], [0, 0, 1, 1], [], []>} : vector<4x8xf32>, vector<8x32xf32>, vector<4x32xf32> -> vector<4x32xf32>
    %c1_167 = arith.constant 1 : index
    %c0_168 = arith.constant 0 : index
    %c0_169 = arith.constant 0 : index
    %223 = vector.load %arg8[%c1_167, %c0_168, %c0_169] : memref<2x32x32xf32, #tpu.memory_space<vmem>>, vector<1x32x32xf32>
    %224 = vector.shape_cast %223 : vector<1x32x32xf32> to vector<32x32xf32>
    %cst_170 = arith.constant dense<0.000000e+00> : vector<4x32xf32>
    %225 = tpu.matmul %222, %224, %cst_170 {dimension_numbers = #tpu.dot_dimension_numbers<[1], [0], [0], [1], [0, 0, 1, 1], [], []>} : vector<4x32xf32>, vector<32x32xf32>, vector<4x32xf32> -> vector<4x32xf32>
    %226 = arith.addf %219, %225 : vector<4x32xf32>
    %c3_171 = arith.constant 3 : index
    %c0_172 = arith.constant 0 : index
    %c0_173 = arith.constant 0 : index
    %227 = vector.load %arg10[%c3_171, %c0_172, %c0_173] : memref<4x3x32xf32, #tpu.memory_space<vmem>>, vector<1x3x32xf32>
    %228 = vector.shape_cast %227 : vector<1x3x32xf32> to vector<3x32xf32>
    %229 = vector.extract_strided_slice %228 {offsets = [0, 0], sizes = [1, 32], strides = [1, 1]} : vector<3x32xf32> to vector<1x32xf32>
    %230 = vector.broadcast %229 : vector<1x32xf32> to vector<4x32xf32>
    %231 = arith.addf %226, %230 : vector<4x32xf32>
    %cst_174 = arith.constant 0.000000e+00 : f32
    %232 = vector.broadcast %cst_174 : f32 to vector<4x32xf32>
    %233 = arith.maximumf %231, %232 : vector<4x32xf32>
    %cst_175 = arith.constant dense<0.000000e+00> : vector<32xf32>
    %234 = vector.multi_reduction <add>, %233, %cst_175 [0] : vector<4x32xf32> to vector<32xf32>
    %235 = vector.shape_cast %234 : vector<32xf32> to vector<1x32xf32>
    %236 = arith.mulf %233, %233 : vector<4x32xf32>
    %cst_176 = arith.constant dense<0.000000e+00> : vector<32xf32>
    %237 = vector.multi_reduction <add>, %236, %cst_176 [0] : vector<4x32xf32> to vector<32xf32>
    %238 = vector.shape_cast %237 : vector<32xf32> to vector<1x32xf32>
    %239 = tpu.concatenate %235, %238 in 0 : vector<1x32xf32>, vector<1x32xf32> -> vector<2x32xf32>
    %c3_177 = arith.constant 3 : index
    %c0_178 = arith.constant 0 : index
    %c0_179 = arith.constant 0 : index
    %240 = vector.load %arg9[%c3_177, %c0_178, %c0_179] : memref<4x32x32xf32, #tpu.memory_space<vmem>>, vector<1x32x32xf32>
    %241 = vector.shape_cast %240 : vector<1x32x32xf32> to vector<32x32xf32>
    %cst_180 = arith.constant dense<0.000000e+00> : vector<2x32xf32>
    %242 = tpu.matmul %239, %241, %cst_180 {dimension_numbers = #tpu.dot_dimension_numbers<[1], [0], [0], [1], [0, 0, 1, 1], [], []>} : vector<2x32xf32>, vector<32x32xf32>, vector<2x32xf32> -> vector<2x32xf32>
    %243 = vector.extract_strided_slice %242 {offsets = [0, 0], sizes = [1, 32], strides = [1, 1]} : vector<2x32xf32> to vector<1x32xf32>
    %cst_181 = arith.constant 2.500000e-01 : f32
    %244 = vector.broadcast %cst_181 : f32 to vector<1x32xf32>
    %245 = arith.mulf %243, %244 : vector<1x32xf32>
    %246 = vector.extract_strided_slice %242 {offsets = [1, 0], sizes = [1, 32], strides = [1, 1]} : vector<2x32xf32> to vector<1x32xf32>
    %cst_182 = arith.constant 2.500000e-01 : f32
    %247 = vector.broadcast %cst_182 : f32 to vector<1x32xf32>
    %248 = arith.mulf %246, %247 : vector<1x32xf32>
    %249 = arith.mulf %245, %245 : vector<1x32xf32>
    %250 = arith.subf %248, %249 : vector<1x32xf32>
    %251 = vector.broadcast %245 : vector<1x32xf32> to vector<4x32xf32>
    %252 = arith.subf %233, %251 : vector<4x32xf32>
    %cst_183 = arith.constant 9.99999974E-6 : f32
    %253 = vector.broadcast %cst_183 : f32 to vector<1x32xf32>
    %254 = arith.addf %250, %253 : vector<1x32xf32>
    %255 = math.rsqrt %254 : vector<1x32xf32>
    %256 = vector.broadcast %255 : vector<1x32xf32> to vector<4x32xf32>
    %257 = arith.mulf %252, %256 : vector<4x32xf32>
    %258 = vector.extract_strided_slice %228 {offsets = [1, 0], sizes = [1, 32], strides = [1, 1]} : vector<3x32xf32> to vector<1x32xf32>
    %259 = vector.broadcast %258 : vector<1x32xf32> to vector<4x32xf32>
    %260 = arith.mulf %257, %259 : vector<4x32xf32>
    %261 = vector.extract_strided_slice %228 {offsets = [2, 0], sizes = [1, 32], strides = [1, 1]} : vector<3x32xf32> to vector<1x32xf32>
    %262 = vector.broadcast %261 : vector<1x32xf32> to vector<4x32xf32>
    %263 = arith.addf %260, %262 : vector<4x32xf32>
    %c0_184 = arith.constant 0 : index
    %c0_185 = arith.constant 0 : index
    %c0_186 = arith.constant 0 : index
    %264 = vector.load %arg11[%c0_184, %c0_185, %c0_186] : memref<1x4x4xf32, #tpu.memory_space<vmem>>, vector<1x4x4xf32>
    %265 = vector.shape_cast %264 : vector<1x4x4xf32> to vector<4x4xf32>
    %cst_187 = arith.constant dense<0.000000e+00> : vector<4x32xf32>
    %266 = tpu.matmul %265, %263, %cst_187 {dimension_numbers = #tpu.dot_dimension_numbers<[1], [0], [0], [1], [0, 0, 1, 1], [], []>} : vector<4x4xf32>, vector<4x32xf32>, vector<4x32xf32> -> vector<4x32xf32>
    %c0_188 = arith.constant 0 : index
    %c0_189 = arith.constant 0 : index
    %c0_190 = arith.constant 0 : index
    %267 = vector.load %arg12[%c0_188, %c0_189, %c0_190] : memref<1x32x8xf32, #tpu.memory_space<vmem>>, vector<1x32x8xf32>
    %268 = vector.shape_cast %267 : vector<1x32x8xf32> to vector<32x8xf32>
    %cst_191 = arith.constant dense<0.000000e+00> : vector<4x8xf32>
    %269 = tpu.matmul %266, %268, %cst_191 {dimension_numbers = #tpu.dot_dimension_numbers<[1], [0], [0], [1], [0, 0, 1, 1], [], []>} : vector<4x32xf32>, vector<32x8xf32>, vector<4x8xf32> -> vector<4x8xf32>
    %c0_192 = arith.constant 0 : index
    %c0_193 = arith.constant 0 : index
    %270 = vector.load %arg13[%c0_192, %c0_193] : memref<1x8xf32, #tpu.memory_space<vmem>>, vector<1x8xf32>
    %271 = vector.broadcast %270 : vector<1x8xf32> to vector<4x8xf32>
    %272 = arith.addf %269, %271 : vector<4x8xf32>
    %c0_194 = arith.constant 0 : index
    %c0_195 = arith.constant 0 : index
    %273 = vector.load %arg14[%c0_194, %c0_195] : memref<4x8xf32, #tpu.memory_space<vmem>>, vector<4x8xf32>
    tpu.vector_store %arg14[%c0_194, %c0_195], %272 {strides = array<i32>} : memref<4x8xf32, #tpu.memory_space<vmem>>, vector<4x8xf32>,
    return
  }
}

</mosaic_0001>

<bundles_post_ra>
// kernel: fwd.1
= control target key start
LH: loop header
LB: loop body
LE: loop exit
PB: predicated region body
PF: predicated region fallthrough
CT: control target
= control target key end

     0   :  { %19 = vsyncpa [#allocation3], 0  ;;  %s5927_s0 = inlined_call_operand.vmem [shape: f32[64,48], index: 0, kind: input, shape index: {}]   ;;  %s5928_s1 = inlined_call_operand.vmem [shape: f32[5,32,64], index: 1, kind: input, shape index: {}]   ;;  %s5929_s2 = inlined_call_operand.vmem [shape: f32[5,48,32], index: 2, kind: input, shape index: {}]   ;;  %s5930_s3 = inlined_call_operand.vmem [shape: f32[5,16,32], index: 3, kind: input, shape index: {}]   ;;  %s5931_s4 = inlined_call_operand.vmem [shape: f32[5,32,32], index: 4, kind: input, shape index: {}]   ;;  %s5932_s5 = inlined_call_operand.hbm [shape: f32[5,8,16], index: 5, kind: input, shape index: {}]   ;;  %s5933_s6 = inlined_call_operand.hbm [shape: f32[5,32,32], index: 6, kind: input, shape index: {}]   ;;  %s5934_s7 = inlined_call_operand.vmem [shape: f32[2,4,8], index: 7, kind: input, shape index: {}]   ;;  %s5935_s8 = inlined_call_operand.hbm [shape: f32[2,32,32], index: 8, kind: input, shape index: {}]   ;;  %s5936_s9 = inlined_call_operand.hbm [shape: f32[4,32,32], index: 9, kind: input, shape index: {}]   ;;  %s5937_s10 = inlined_call_operand.vmem [shape: f32[4,3,32], index: 10, kind: input, shape index: {}]   ;;  %s5938_s11 = inlined_call_operand.vmem [shape: f32[1,4,4], index: 11, kind: input, shape index: {}]   ;;  %s5939_s12 = inlined_call_operand.vmem [shape: f32[1,32,8], index: 12, kind: input, shape index: {}]   ;;  %s5940_s13 = inlined_call_operand.vmem [shape: f32[1,8], index: 13, kind: input, shape index: {}]   ;;  %s5941_s14 = inlined_call_operand.hbm [shape: f32[4,8], index: 14, kind: output, shape index: {}]  }
   0x1   :  { %20 = vsyncpa [#allocation6], 0 }
   0x2   :  { %21 = vsyncpa [#allocation9], 0 }
   0x3   :  { %22 = vsyncpa [#allocation4], 0  ;;  %s5186_s29 = smov [#allocation5]   ;;  %s5187_s15 = smov [#allocation2]  }
   0x4   :  { %s50_s30 = sshll.u32 %s5186_s29, 4  ;;  %s38_s16 = sshll.u32 %s5187_s15, 4  ;;  %s51_s30 = int_to_ptr.vmem [resolvable:$true] %s50_s30  ;;  %s5271_s16 = int_to_ptr.vmem [resolvable:$true] %s38_s16 }
   0x5   :  { %s5068_s19 = scalar_lea.hbm %s5933_s6, 2560 }
   0x6   :  { %p5069_p0 = scmp.ne.s32.totalorder %s5933_s6, %s5068_s19  ;;  %p5072_p1 = scmp.lt.u32.totalorder %s5068_s19, %s5933_s6 }
   0x8   :  { %p5074_p2 = pnand %p5072_p1, %p5069_p0 }
   0xa   :  { %5077 = shalt.err (!%p5074_p2)
}
   0xb   :  { %s5078_s24 = scalar_lea.vmem %s51_s30, 2560  ;;  %p5083_p4 = scmp.lt.s32.totalorder %s51_s30, %s51_s30 }
   0xc   :  { %p5079_p3 = scmp.ne.s32.totalorder %s51_s30, %s5078_s24  ;;  %p5084_p5 = scmp.lt.s32.totalorder %s5078_s24, %s5078_s24 }
   0xe   :  { %p5085_p6 = por %p5084_p5, %p5083_p4 }
  0x10   :  { %p5086_p7 = pnand %p5085_p6, %p5079_p3 }
  0x12   :  { %5089 = shalt.err (!%p5086_p7)
}
  0x13   :  { %s5188_s25 = smov 128   ;;  %s5189_s26 = smov 8  }
  0x14   :  { %56 = dma.hbm_to_vmem [thread:$0]  %s5933_s6, 2560, %s51_s30, [#allocation6], %s5188_s25, %s5188_s25, %s5189_s26  }
  0x15   :  { %s5090_s17 = scalar_lea.hbm %s5932_s5, 640 }
  0x16   :  { %p5091_p8 = scmp.ne.s32.totalorder %s5932_s5, %s5090_s17  ;;  %p5094_p9 = scmp.lt.u32.totalorder %s5090_s17, %s5932_s5 }
  0x18   :  { %p5096_p10 = pnand %p5094_p9, %p5091_p8 }
  0x1a   :  { %5099 = shalt.err (!%p5096_p10)
}
  0x1b   :  { %s5100_s22 = scalar_lea.vmem %s5271_s16, 640  ;;  %p5105_p12 = scmp.lt.s32.totalorder %s5271_s16, %s5271_s16 }
  0x1c   :  { %p5101_p11 = scmp.ne.s32.totalorder %s5271_s16, %s5100_s22  ;;  %p5106_p13 = scmp.lt.s32.totalorder %s5100_s22, %s5100_s22 }
  0x1e   :  { %p5107_p0 = por %p5106_p13, %p5105_p12 }
  0x20   :  { %p5108_p1 = pnand %p5107_p0, %p5101_p11 }
  0x22   :  { %5111 = shalt.err (!%p5108_p1)
}
  0x23   :  { %44 = dma.hbm_to_vmem [thread:$0]  %s5932_s5, 640, %s5271_s16, [#allocation3], %s5188_s25, %s5188_s25, %s5189_s26  }
  0x24   :  { %s5190_s23 = smov [#allocation7]   ;;  %s5191_s27 = smov [#allocation8]  }
  0x25   :  { %s64_s24 = sshll.u32 %s5190_s23, 4  ;;  %s76_s28 = sshll.u32 %s5191_s27, 4  ;;  %s65_s24 = int_to_ptr.vmem [resolvable:$true] %s64_s24  ;;  %s5308_s28 = int_to_ptr.vmem [resolvable:$true] %s76_s28 }
  0x26   :  { %s5112_s17 = scalar_lea.hbm %s5935_s8, 1024 }
  0x27   :  { %p5113_p2 = scmp.ne.s32.totalorder %s5935_s8, %s5112_s17  ;;  %p5116_p3 = scmp.lt.u32.totalorder %s5112_s17, %s5935_s8 }
  0x29   :  { %p5118_p4 = pnand %p5116_p3, %p5113_p2 }
  0x2b   :  { %5121 = shalt.err (!%p5118_p4)
}
  0x2c   :  { %s5122_s5 = scalar_lea.vmem %s65_s24, 1024  ;;  %p5127_p6 = scmp.lt.s32.totalorder %s65_s24, %s65_s24 }
  0x2d   :  { %p5123_p5 = scmp.ne.s32.totalorder %s65_s24, %s5122_s5  ;;  %p5128_p7 = scmp.lt.s32.totalorder %s5122_s5, %s5122_s5 }
  0x2f   :  { %p5129_p8 = por %p5128_p7, %p5127_p6 }
  0x31   :  { %p5130_p9 = pnand %p5129_p8, %p5123_p5 }
  0x33   :  { %5133 = shalt.err (!%p5130_p9)
}
  0x34   :  { %70 = dma.hbm_to_vmem [thread:$0]  %s5935_s8, 1024, %s65_s24, [#allocation6], %s5188_s25, %s5188_s25, %s5189_s26  }
  0x35   :  { %s5134_s23 = scalar_lea.hbm %s5936_s9, 2048 }
  0x36   :  { %p5135_p10 = scmp.ne.s32.totalorder %s5936_s9, %s5134_s23  ;;  %p5138_p11 = scmp.lt.u32.totalorder %s5134_s23, %s5936_s9 }
  0x38   :  { %p5140_p12 = pnand %p5138_p11, %p5135_p10 }
  0x3a   :  { %5143 = shalt.err (!%p5140_p12)
}
  0x3b   :  { %s5144_s18 = scalar_lea.vmem %s5308_s28, 2048  ;;  %p5149_p0 = scmp.lt.s32.totalorder %s5308_s28, %s5308_s28 }
  0x3c   :  { %p5145_p13 = scmp.ne.s32.totalorder %s5308_s28, %s5144_s18  ;;  %p5150_p1 = scmp.lt.s32.totalorder %s5144_s18, %s5144_s18 }
  0x3e   :  { %p5151_p2 = por %p5150_p1, %p5149_p0 }
  0x40   :  { %p5152_p3 = pnand %p5151_p2, %p5145_p13 }
  0x42   :  { %5155 = shalt.err (!%p5152_p3)
}
  0x43   :  { %82 = dma.hbm_to_vmem [thread:$0]  %s5936_s9, 2048, %s5308_s28, [#allocation9], %s5188_s25, %s5188_s25, %s5189_s26  }
  0x44   :  { %5178 = dma.done.wait [#allocation3], 640  }
  0x45   :  { %5179 = vsyncadd [#allocation3], 4294966656 }
  0x46   :  { %5180 = dma.done.wait [#allocation6], 3584  }
  0x47   :  { %5181 = vsyncadd [#allocation6], 4294963712 }
  0x48   :  { %5182 = dma.done.wait [#allocation9], 2048  }
  0x49   :  { %5183 = vsyncadd [#allocation9], 4294965248  ;;  %v103_v0 = vld [vmem:[%s5927_s0] sm:$0xff]  ;;  %v104_v1 = vld [vmem:[%s5927_s0 + $0x8] sm:$0xff]  ;;  %vm115_vm0 = vcmask 523264   ;;  %vm328_vm1 = vcmask 392192  }
  0x4a   :  { %v105_v2 = vld [vmem:[%s5927_s0 + $0x10] sm:$0xff]  ;;  %v5354_v3 = vpack.c.bf16 %v104_v1, %v103_v0  ;;  %v106_v4 = vld [vmem:[%s5927_s0 + $0x18] sm:$0xff]  ;;  %v107_v6 = vld [vmem:[%s5927_s0 + $0x20] sm:$0xff]  ;;  %vm5193_vm2 = vmmov 0   ;;  %vm1166_vm3 = vcmask 261120   ;;  %vm1197_vm4 = vcmask 1040384  }
  0x4b   :  { %v5359_v5 = vpack.c.bf16 %v106_v4, %v105_v2  ;;  %v108_v7 = vld [vmem:[%s5927_s0 + $0x28] sm:$0xff]  ;;  %v3830_v8 = vld [vmem:[%s5928_s1 + $0x20] sm:$0xff]  ;;  %v109_v11 = vld [vmem:[%s5927_s0 + $0x30] sm:$0xff]  ;;  %vm2312_vm5 = vcmask 130048   ;;  %vm3209_vm6 = vcmask 64512   ;;  %vm3521_vm7 = vcmask 257024  }
  0x4c   :  { %4736 = vmatprep.subr.bf16.mxu1 %v5354_v3  ;;  %4720 = vmatprep.subr.bf16.mxu0 %v5354_v3  ;;  %v111_v9 = vld [vmem:[%s5928_s1] sm:$0xff]  ;;  %v5378_v10 = vpack.c.bf16 %v108_v7, %v107_v6  ;;  %v110_v12 = vld [vmem:[%s5927_s0 + $0x38] sm:$0xff]  ;;  %v3838_v14 = vld [vmem:[%s5929_s2 + $0x30] sm:$0xff]  ;;  %vm3649_vm8 = vcmask 1043456   ;;  %vm3645_vm9 = vcmask 31744   ;;  %vm3807_vm10 = vcmask 60416  }
  0x4d   :  { %4738 = vmatpush3.bf16.msra.mxu1 %v5354_v3  ;;  %4722 = vmatpush3.bf16.msra.mxu0 %v5354_v3  ;;  %v5392_v13 = vpack.c.bf16 %v110_v12, %v109_v11  ;;  %v3839_v15 = vld [vmem:[%s5929_s2 + $0x38] sm:$0xff]  ;;  %v3831_v17 = vld [vmem:[%s5928_s1 + $0x28] sm:$0xff]  ;;  %v3832_v19 = vld [vmem:[%s5928_s1 + $0x30] sm:$0xff] }
  0x4e   :  { %4740 = vmatprep.subr.bf16.mxu1 %v5359_v5  ;;  %4724 = vmatprep.subr.bf16.mxu0 %v5359_v5  ;;  %v4751_v16 = vpack.c.bf16 %v3839_v15, %v3838_v14  ;;  %v112_v18 = vld [vmem:[%s5928_s1 + $0x8] sm:$0xff]  ;;  %v113_v20 = vld [vmem:[%s5928_s1 + $0x10] sm:$0xff]  ;;  %v3840_v21 = vld [vmem:[%s5929_s2 + $0x40] sm:$0xff] }
  0x4f   :  { %4265 = vmatprep.mubr.msk.f32.mxu1 %vm115_vm0, %v3830_v8  ;;  %4243 = vmatprep.mubr.msk.f32.mxu0 %vm115_vm0, %v111_v9  ;;  %v3841_v22 = vld [vmem:[%s5929_s2 + $0x48] sm:$0xff]  ;;  %v3833_v23 = vld [vmem:[%s5928_s1 + $0x38] sm:$0xff]  ;;  %v3842_v25 = vld [vmem:[%s5929_s2 + $0x50] sm:$0xff] }
  0x50   :  { %v114_v24 = vld [vmem:[%s5928_s1 + $0x18] sm:$0xff]  ;;  %v3852_v27 = vld [vmem:[%s5928_s1 + $0x40] sm:$0xff]  ;;  %v4755_v28 = vpack.c.bf16 %v3841_v22, %v3840_v21  ;;  %v3853_v30 = vld [vmem:[%s5928_s1 + $0x48] sm:$0xff] }
  0x51   :  { %4742 = vmatpush3.bf16.msra.mxu1 %v5359_v5  ;;  %4726 = vmatpush3.bf16.msra.mxu0 %v5359_v5  ;;  %v3843_v26 = vld [vmem:[%s5929_s2 + $0x58] sm:$0xff]  ;;  %v3854_v31 = vld [vmem:[%s5928_s1 + $0x50] sm:$0xff]  ;;  %v3870_v33 = vld [vmem:[%s5928_s1 + $0x60] sm:$0xff] }
  0x52   :  { %4744 = vmatprep.subr.bf16.mxu1 %v5378_v10  ;;  %4728 = vmatprep.subr.bf16.mxu0 %v5378_v10  ;;  %v4759_v29 = vpack.c.bf16 %v3843_v26, %v3842_v25  ;;  %v3855_v32 = vld [vmem:[%s5928_s1 + $0x58] sm:$0xff]  ;;  %v3871_v34 = vld [vmem:[%s5928_s1 + $0x68] sm:$0xff]  ;;  %v3872_v35 = vld [vmem:[%s5928_s1 + $0x70] sm:$0xff] }
  0x53   :  { %v3873_v36 = vld [vmem:[%s5928_s1 + $0x78] sm:$0xff]  ;;  %v3888_v37 = vld [vmem:[%s5928_s1 + $0x80] sm:$0xff]  ;;  %v3889_v38 = vld [vmem:[%s5928_s1 + $0x88] sm:$0xff] }
  0x54   :  { %v3890_v39 = vld [vmem:[%s5928_s1 + $0x90] sm:$0xff]  ;;  %v3891_v40 = vld [vmem:[%s5928_s1 + $0x98] sm:$0xff]  ;;  %v213_v41 = vld [vmem:[%s5929_s2] sm:$0xff] }
  0x55   :  { %4746 = vmatpush3.bf16.msra.mxu1 %v5378_v10  ;;  %4730 = vmatpush3.bf16.msra.mxu0 %v5378_v10  ;;  %v214_v42 = vld [vmem:[%s5929_s2 + $0x8] sm:$0xff]  ;;  %v215_v44 = vld [vmem:[%s5929_s2 + $0x10] sm:$0xff]  ;;  %v216_v45 = vld [vmem:[%s5929_s2 + $0x18] sm:$0xff] }
  0x56   :  { %4748 = vmatprep.subr.bf16.mxu1 %v5392_v13  ;;  %4732 = vmatprep.subr.bf16.mxu0 %v5392_v13  ;;  %v4763_v43 = vpack.c.bf16 %v214_v42, %v213_v41  ;;  %v4767_v49 = vpack.c.bf16 %v216_v45, %v215_v44  ;;  %v217_v51 = vld [vmem:[%s5929_s2 + $0x20] sm:$0xff]  ;;  %v218_v52 = vld [vmem:[%s5929_s2 + $0x28] sm:$0xff]  ;;  %v3862_v61 = vld [vmem:[%s5929_s2 + $0x70] sm:$0xff]  ;;  %v1154_v41 = vlaneseq }
  0x57   :  { %v4771_v56 = vpack.c.bf16 %v218_v52, %v217_v51  ;;  %v3860_v58 = vld [vmem:[%s5929_s2 + $0x60] sm:$0xff]  ;;  %v3861_v59 = vld [vmem:[%s5929_s2 + $0x68] sm:$0xff]  ;;  %v3863_v62 = vld [vmem:[%s5929_s2 + $0x78] sm:$0xff] }
  0x58   :  { %v4791_v60 = vpack.c.bf16 %v3861_v59, %v3860_v58  ;;  %v4795_v63 = vpack.c.bf16 %v3863_v62, %v3862_v61  ;;  %v3864_v0 = vld [vmem:[%s5929_s2 + $0x80] sm:$0xff]  ;;  %v3865_v1 = vld [vmem:[%s5929_s2 + $0x88] sm:$0xff]  ;;  %v3879_v6 = vld [vmem:[%s5929_s2 + $0x98] sm:$0xff]  ;;  %v5611_v42 = vshrl.u32 %v1154_v41, 7 }
  0x59   :  { %4750 = vmatpush3.bf16.msra.mxu1 %v5392_v13  ;;  %4734 = vmatpush3.bf16.msra.mxu0 %v5392_v13  ;;  %v4799_v4 = vpack.c.bf16 %v3865_v1, %v3864_v0  ;;  %v3881_v11 = vld [vmem:[%s5929_s2 + $0xa8] sm:$0xff]  ;;  %v3883_v14 = vld [vmem:[%s5929_s2 + $0xb8] sm:$0xff]  ;;  %v3898_v21 = vld [vmem:[%s5929_s2 + $0xd0] sm:$0xff] }
  0x5a   :  { %4776 = vmatprep.subr.bf16.mxu1 %v5354_v3  ;;  %4752 = vmatprep.subr.bf16.mxu0 %v4751_v16  ;;  %v3899_v22 = vld [vmem:[%s5929_s2 + $0xd8] sm:$0xff]  ;;  %v3900_v26 = vld [vmem:[%s5929_s2 + $0xe0] sm:$0xff] }
  0x5b   :  { %v4851_v25 = vpack.c.bf16 %v3899_v22, %v3898_v21  ;;  %v5619_v44 = vld [vmem:[%s5937_s10] sm:$0x7] }
  0x5c   :  { %4266 = vmatmul.mubr.msk.f32.vlgmr.msra.gmra.mrb[0].mxu1 %vm115_vm0, %v3831_v17  ;;  %4244 = vmatmul.mubr.msk.f32.vlgmr.msra.gmra.mrb[0].mxu0 %vm115_vm0, %v112_v18  ;;  %v3897_v17 = vld [vmem:[%s5929_s2 + $0xc8] sm:$0xff] }
  0x5d   :  { %4778 = vmatpush3.bf16.msra.mxu1 %v5354_v3  ;;  %4268 = vmatprep.mubr.msk.f32.mxu1 %vm115_vm0, %v3832_v19 }
  0x5e   :  { %4780 = vmatprep.subr.bf16.mxu1 %v5359_v5  ;;  %4246 = vmatprep.mubr.msk.f32.mxu0 %vm115_vm0, %v113_v20 }
  0x5f   :  { %4754 = vmatpush3.bf16.msra.mxu0 %v4751_v16  ;;  %v3896_v16 = vld [vmem:[%s5929_s2 + $0xc0] sm:$0xff] }
  0x60   :  { %4269 = vmatmul.mubr.msk.f32.gmra.mrb[2].mxu1 %vm115_vm0, %v3833_v23  ;;  %4247 = vmatmul.mubr.msk.f32.gmra.mrb[2].mxu0 %vm115_vm0, %v114_v24  ;;  %v4847_v20 = vpack.c.bf16 %v3897_v17, %v3896_v16 }
  0x61   :  { %4782 = vmatpush3.bf16.msra.mxu1 %v5359_v5  ;;  %4323 = vmatprep.mubr.msk.f32.mxu1 %vm115_vm0, %v3852_v27  ;;  %v3901_v27 = vld [vmem:[%s5929_s2 + $0xe8] sm:$0xff] }
  0x62   :  { %4784 = vmatprep.subr.bf16.mxu1 %v5378_v10  ;;  %4756 = vmatprep.subr.bf16.mxu0 %v4755_v28 }
  0x63   :  { %4758 = vmatpush3.bf16.msra.mxu0 %v4755_v28  ;;  %v4855_v28 = vpack.c.bf16 %v3901_v27, %v3900_v26  ;;  %v1316_v26 = vld [vmem:[%s5930_s3] sm:$0xff] }
  0x64   :  { %4760 = vmatprep.subr.bf16.mxu0 %v4759_v29 }
  0x65   :  { %4786 = vmatpush3.bf16.msra.mxu1 %v5378_v10 }
  0x66   :  { %4788 = vmatprep.subr.bf16.mxu1 %v5392_v13 }
  0x67   :  { %4762 = vmatpush3.bf16.msra.mxu0 %v4759_v29 }
  0x68   :  { %4764 = vmatprep.subr.bf16.mxu0 %v4763_v43 }
  0x69   :  { %4790 = vmatpush3.bf16.msra.mxu1 %v5392_v13 }
  0x6a   :  { %4804 = vmatprep.subr.bf16.mxu1 %v5354_v3 }
  0x6c   :  { %4324 = vmatmul.mubr.msk.f32.vlgmr.msra.gmra.mrb[4].mxu1 %vm115_vm0, %v3853_v30 }
  0x6d   :  { %4806 = vmatpush3.bf16.msra.mxu1 %v5354_v3  ;;  %4326 = vmatprep.mubr.msk.f32.mxu1 %vm115_vm0, %v3854_v31 }
  0x6e   :  { %4808 = vmatprep.subr.bf16.mxu1 %v5359_v5 }
  0x70   :  { %4327 = vmatmul.mubr.msk.f32.gmra.mrb[6].mxu1 %vm115_vm0, %v3855_v32 }
  0x71   :  { %4810 = vmatpush3.bf16.msra.mxu1 %v5359_v5  ;;  %4363 = vmatprep.mubr.msk.f32.mxu1 %vm115_vm0, %v3870_v33  ;;  %v1199_v33 = vld [vmem:[#allocation8] sm:$0xff] }
  0x72   :  { %4812 = vmatprep.subr.bf16.mxu1 %v5378_v10 }
  0x75   :  { %4814 = vmatpush3.bf16.msra.mxu1 %v5378_v10 }
  0x76   :  { %4816 = vmatprep.subr.bf16.mxu1 %v5392_v13 }
  0x79   :  { %4818 = vmatpush3.bf16.msra.mxu1 %v5392_v13 }
  0x7a   :  { %4832 = vmatprep.subr.bf16.mxu1 %v5354_v3 }
  0x7c   :  { %4364 = vmatmul.mubr.msk.f32.vlgmr.msra.gmra.mrb[8].mxu1 %vm115_vm0, %v3871_v34  ;;  %v1200_v34 = vld [vmem:[#allocation8 + $0x8] sm:$0xff] }
  0x7d   :  { %4834 = vmatpush3.bf16.msra.mxu1 %v5354_v3  ;;  %4366 = vmatprep.mubr.msk.f32.mxu1 %vm115_vm0, %v3872_v35  ;;  %v4860_v35 = vpack.c.bf16 %v1200_v34, %v1199_v33 }
  0x7e   :  { %4836 = vmatprep.subr.bf16.mxu1 %v5359_v5 }
  0x80   :  { %4367 = vmatmul.mubr.msk.f32.gmra.mrb[10].mxu1 %vm115_vm0, %v3873_v36  ;;  %v5192_v36 = vmov 0.0|0.0  }
  0x81   :  { %4838 = vmatpush3.bf16.msra.mxu1 %v5359_v5  ;;  %4403 = vmatprep.mubr.msk.f32.mxu1 %vm115_vm0, %v3888_v37  ;;  %v3878_v5 = vld [vmem:[%s5929_s2 + $0x90] sm:$0xff]  ;;  %v1201_v37 = vld [vmem:[#allocation8 + $0x10] sm:$0xff] }
  0x82   :  { %4840 = vmatprep.subr.bf16.mxu1 %v5378_v10  ;;  %v4819_v8 = vpack.c.bf16 %v3879_v6, %v3878_v5 }
  0x85   :  { %4842 = vmatpush3.bf16.msra.mxu1 %v5378_v10  ;;  %v3880_v10 = vld [vmem:[%s5929_s2 + $0xa0] sm:$0xff] }
  0x86   :  { %4844 = vmatprep.subr.bf16.mxu1 %v5392_v13  ;;  %v4823_v12 = vpack.c.bf16 %v3881_v11, %v3880_v10 }
  0x89   :  { %4846 = vmatpush3.bf16.msra.mxu1 %v5392_v13  ;;  %v3882_v13 = vld [vmem:[%s5929_s2 + $0xb0] sm:$0xff] }
  0x8a   :  { %v4827_v15 = vpack.c.bf16 %v3883_v14, %v3882_v13  ;;  %4859 = vmatprep.subr.bf16.mxu1 %v5192_v36 }
  0x8c   :  { %4404 = vmatmul.mubr.msk.f32.vlgmr.msra.gmra.mrb[12].mxu1 %vm115_vm0, %v3889_v38  ;;  %v1202_v38 = vld [vmem:[#allocation8 + $0x18] sm:$0xff] }
  0x8d   :  { %4406 = vmatprep.mubr.msk.f32.mxu1 %vm115_vm0, %v3890_v39  ;;  %4861 = vmatpush3.bf16.msra.mxu1 %v4860_v35  ;;  %v4863_v39 = vpack.c.bf16 %v1202_v38, %v1201_v37  ;;  %v5653_v35 = vsub.s32 1, %v5611_v42  ;;  %v5656_v37 = vsub.s32 2, %v5611_v42 }
  0x8e   :  { %4862 = vmatprep.subr.bf16.mxu1 %v5192_v36 }
  0x90   :  { %4407 = vmatmul.mubr.msk.f32.gmra.mrb[14].mxu1 %vm115_vm0, %v3891_v40  ;;  %v5194_v40 = vmov 0.0  }
  0x91   :  { %4435 = vmatprep.mubr.msk.f32.mxu1 %vm5193_vm2, %v5194_v40  ;;  %4864 = vmatpush3.bf16.msra.mxu1 %v4863_v39  ;;  %v1303_v39 = vrot.slane %v5619_v44, %v5653_v35 }
 0x12f   :  { %v4267_v46 = vpop.f32.mrb[0].mxu1  ;;  %v4245_v47 = vpop.f32.mrb[0].mxu0 }
 0x130   :  { %v302_v48 = vpop.f32.mrb[1].mxu1  ;;  %v194_v50 = vpop.f32.mrb[1].mxu0 }
 0x131   :  { %4283 = vmatprep.mubr.msk.f32.mxu0 %vm328_vm1, %v302_v48 }
 0x132   :  { %4284 = vmatmul.mubr.msk.f32.vlgmr.msra.gmra.mrb[4].mxu0 %vm328_vm1, %v4267_v46 }
 0x133   :  { %4766 = vmatpush3.bf16.msra.mxu0 %v4763_v43  ;;  %v4270_v53 = vpop.f32.mrb[2].mxu1  ;;  %v4248_v54 = vpop.f32.mrb[2].mxu0  ;;  %v5614_v43 = vsub.s32 0, %v5611_v42 }
 0x134   :  { %4768 = vmatprep.subr.bf16.mxu0 %v4767_v49  ;;  %v312_v55 = vpop.f32.mrb[3].mxu1  ;;  %v204_v57 = vpop.f32.mrb[3].mxu0 }
 0x135   :  { %4286 = vmatprep.mubr.msk.f32.mxu0 %vm328_vm1, %v312_v55  ;;  %v1157_v45 = vrot.slane %v5619_v44, %v5614_v43 }
 0x136   :  { %4287 = vmatmul.mubr.msk.f32.gmra.mrb[6].mxu0 %vm328_vm1, %v4270_v53 }
 0x137   :  { %4770 = vmatpush3.bf16.msra.mxu0 %v4767_v49  ;;  %4301 = vmatprep.mubr.msk.f32.mxu0 %vm328_vm1, %v194_v50 }
 0x138   :  { %4772 = vmatprep.subr.bf16.mxu0 %v4771_v56 }
 0x13b   :  { %4774 = vmatpush3.bf16.msra.mxu0 %v4771_v56 }
 0x13c   :  { %4792 = vmatprep.subr.bf16.mxu0 %v4791_v60 }
 0x13e   :  { %4302 = vmatmul.mubr.msk.f32.vlgmr.msra.gmra.mrb[4].mxu0 %vm328_vm1, %v4245_v47 }
 0x13f   :  { %4794 = vmatpush3.bf16.msra.mxu0 %v4791_v60  ;;  %v4325_v2 = vpop.f32.mrb[4].mxu1  ;;  %4304 = vmatprep.mubr.msk.f32.mxu0 %vm328_vm1, %v204_v57 }
 0x140   :  { %v606_v3 = vpop.f32.mrb[5].mxu1  ;;  %4796 = vmatprep.subr.bf16.mxu0 %v4795_v63 }
 0x142   :  { %4305 = vmatmul.mubr.msk.f32.gmra.mrb[6].mxu0 %vm328_vm1, %v4248_v54 }
 0x143   :  { %4798 = vmatpush3.bf16.msra.mxu0 %v4795_v63  ;;  %4341 = vmatprep.mubr.msk.f32.mxu0 %vm328_vm1, %v606_v3  ;;  %v4328_v7 = vpop.f32.mrb[6].mxu1 }
 0x144   :  { %4800 = vmatprep.subr.bf16.mxu0 %v4799_v4  ;;  %v616_v9 = vpop.f32.mrb[7].mxu1 }
 0x147   :  { %4802 = vmatpush3.bf16.msra.mxu0 %v4799_v4 }
 0x148   :  { %4820 = vmatprep.subr.bf16.mxu0 %v4819_v8 }
 0x14a   :  { %4342 = vmatmul.mubr.msk.f32.vlgmr.msra.gmra.mrb[4].mxu0 %vm328_vm1, %v4325_v2 }
 0x14b   :  { %4822 = vmatpush3.bf16.msra.mxu0 %v4819_v8  ;;  %4344 = vmatprep.mubr.msk.f32.mxu0 %vm328_vm1, %v616_v9 }
 0x14c   :  { %4824 = vmatprep.subr.bf16.mxu0 %v4823_v12 }
 0x14e   :  { %4345 = vmatmul.mubr.msk.f32.gmra.mrb[6].mxu0 %vm328_vm1, %v4328_v7 }
 0x14f   :  { %4826 = vmatpush3.bf16.msra.mxu0 %v4823_v12  ;;  %v4365_v18 = vpop.f32.mrb[8].mxu1 }
 0x150   :  { %v816_v19 = vpop.f32.mrb[9].mxu1  ;;  %4828 = vmatprep.subr.bf16.mxu0 %v4827_v15 }
 0x151   :  { %4381 = vmatprep.mubr.msk.f32.mxu0 %vm328_vm1, %v816_v19 }
 0x153   :  { %4830 = vmatpush3.bf16.msra.mxu0 %v4827_v15  ;;  %v4368_v23 = vpop.f32.mrb[10].mxu1 }
 0x154   :  { %4848 = vmatprep.subr.bf16.mxu0 %v4847_v20  ;;  %v826_v24 = vpop.f32.mrb[11].mxu1 }
 0x156   :  { %4382 = vmatmul.mubr.msk.f32.vlgmr.msra.gmra.mrb[4].mxu0 %vm328_vm1, %v4365_v18 }
 0x157   :  { %4850 = vmatpush3.bf16.msra.mxu0 %v4847_v20  ;;  %4384 = vmatprep.mubr.msk.f32.mxu0 %vm328_vm1, %v826_v24 }
 0x158   :  { %4852 = vmatprep.subr.bf16.mxu0 %v4851_v25 }
 0x15a   :  { %4385 = vmatmul.mubr.msk.f32.gmra.mrb[6].mxu0 %vm328_vm1, %v4368_v23 }
 0x15b   :  { %4854 = vmatpush3.bf16.msra.mxu0 %v4851_v25  ;;  %v3909_v25 = vld [vmem:[%s5930_s3 + $0x10] sm:$0xff] }
 0x15c   :  { %4856 = vmatprep.subr.bf16.mxu0 %v4855_v28 }
 0x15f   :  { %v4405_v29 = vpop.f32.mrb[12].mxu1  ;;  %4858 = vmatpush3.bf16.msra.mxu0 %v4855_v28 }
 0x160   :  { %v1026_v30 = vpop.f32.mrb[13].mxu1 }
 0x161   :  { %4421 = vmatprep.mubr.msk.f32.mxu0 %vm328_vm1, %v1026_v30 }
 0x162   :  { %4422 = vmatmul.mubr.msk.f32.vlgmr.msra.gmra.mrb[4].mxu0 %vm328_vm1, %v4405_v29 }
 0x163   :  { %v4408_v31 = vpop.f32.mrb[14].mxu1 }
 0x164   :  { %v1036_v32 = vpop.f32.mrb[15].mxu1 }
 0x165   :  { %4424 = vmatprep.mubr.msk.f32.mxu0 %vm328_vm1, %v1036_v32 }
 0x166   :  { %4425 = vmatmul.mubr.msk.f32.gmra.mrb[6].mxu0 %vm328_vm1, %v4408_v31 }
 0x167   :  { %4457 = vmatprep.mubr.msk.f32.mxu0 %vm1166_vm3, %v3909_v25  ;;  %v3927_v25 = vld [vmem:[%s5931_s4 + $0x50] sm:$0xff] }
 0x235   :  { %v4423_v46 = vpop.f32.mrb[4].mxu0 }
 0x236   :  { %v1159_v47 = vadd.f32 %v4423_v46, %v1157_v45  ;;  %v1130_v48 = vpop.f32.mrb[5].mxu0 }
 0x237   :  { %v1158_v49 = vadd.f32 %v1157_v45, %v1130_v48 }
 0x238   :  { %v5623_v50 = vmax.f32 %v1159_v47, 0.0 }
 0x239   :  { %v5625_v51 = vmax.f32 %v1158_v49, 0.0  ;;  %v4426_v52 = vpop.f32.mrb[6].mxu0  ;;  %v1311_v49 = vrot.slane %v5619_v44, %v5656_v37  ;;  %v3914_v44 = vld [vmem:[%s5931_s4 + $0x28] sm:$0xff] }
 0x23a   :  { %v1181_v53 = vmul.f32 %v5623_v50, %v5623_v50  ;;  %v1161_v54 = vadd.f32 %v4426_v52, %v1157_v45  ;;  %v1140_v55 = vpop.f32.mrb[7].mxu0  ;;  %v1168_v56 = vsel %vm1166_vm3, %v5623_v50, 0.0 }
 0x23b   :  { %v1167_v57 = vsel %vm1166_vm3, %v5625_v51, 0.0  ;;  %v1180_v58 = vmul.f32 %v5625_v51, %v5625_v51  ;;  %v1160_v59 = vadd.f32 %v1157_v45, %v1140_v55 }
 0x23c   :  { %v1165_v60 = vmax.f32 %v1161_v54, 0.0  ;;  %v1185_v61 = vsel %vm1166_vm3, %v1181_v53, 0.0  ;;  %v1169_v0 = vadd.f32 %v1168_v56, %v1167_v57 }
 0x23d   :  { %v1184_v62 = vsel %vm1166_vm3, %v1180_v58, 0.0  ;;  %v1164_v63 = vmax.f32 %v1160_v59, 0.0 }
 0x23e   :  { %v1183_v1 = vmul.f32 %v1165_v60, %v1165_v60  ;;  %v1186_v4 = vadd.f32 %v1185_v61, %v1184_v62  ;;  %v1172_v6 = vsel %vm1166_vm3, %v1165_v60, 0.0 }
 0x23f   :  { %v1170_v2 = vsel %vm1166_vm3, %v1164_v63, 0.0  ;;  %v1182_v3 = vmul.f32 %v1164_v63, %v1164_v63 }
 0x240   :  { %v1171_v5 = vadd.f32 %v1170_v2, %v1169_v0  ;;  %v1189_v10 = vsel %vm1166_vm3, %v1183_v1, 0.0  ;;  %v3915_v1 = vld [vmem:[%s5931_s4 + $0x30] sm:$0xff]  ;;  %v3916_v2 = vld [vmem:[%s5931_s4 + $0x38] sm:$0xff] }
 0x241   :  { %v1187_v7 = vsel %vm1166_vm3, %v1182_v3, 0.0  ;;  %v3910_v3 = vld [vmem:[%s5930_s3 + $0x18] sm:$0xff] }
 0x242   :  { %v1173_v8 = vadd.f32 %v1172_v6, %v1171_v5  ;;  %v1188_v9 = vadd.f32 %v1187_v7, %v1186_v4  ;;  %v1317_v4 = vld [vmem:[%s5930_s3 + $0x8] sm:$0xff]  ;;  %v3921_v5 = vld [vmem:[%s5930_s3 + $0x20] sm:$0xff]  ;;  %v4885_v6 = vpack.c.bf16 %v3916_v2, %v3915_v1 }
 0x243   :  { %v3922_v7 = vld [vmem:[%s5930_s3 + $0x28] sm:$0xff] }
 0x244   :  { %v1174_v11 = vrot.slane %v1173_v8, 4  ;;  %v1190_v12 = vadd.f32 %v1189_v10, %v1188_v9  ;;  %v3932_v9 = vld [vmem:[%s5930_s3 + $0x38] sm:$0xff]  ;;  %v3941_v10 = vld [vmem:[%s5930_s3 + $0x40] sm:$0xff] }
 0x246   :  { %v1175_v13 = vadd.f32 %v1174_v11, %v1173_v8  ;;  %v1191_v14 = vrot.slane %v1190_v12, 4  ;;  %v3931_v8 = vld [vmem:[%s5930_s3 + $0x30] sm:$0xff]  ;;  %v3942_v11 = vld [vmem:[%s5930_s3 + $0x48] sm:$0xff] }
 0x248   :  { %v1176_v15 = vrot.slane %v1175_v13, 2  ;;  %v1192_v16 = vadd.f32 %v1191_v14, %v1190_v12  ;;  %v1399_v12 = vld [vmem:[%s5931_s4] sm:$0xff] }
 0x24a   :  { %v1177_v17 = vadd.f32 %v1176_v15, %v1175_v13  ;;  %v1193_v18 = vrot.slane %v1192_v16, 2  ;;  %v1400_v13 = vld [vmem:[%s5931_s4 + $0x8] sm:$0xff]  ;;  %v1401_v15 = vld [vmem:[%s5931_s4 + $0x10] sm:$0xff] }
 0x24b   :  { %v4889_v14 = vpack.c.bf16 %v1400_v13, %v1399_v12 }
 0x24c   :  { %v1178_v19 = vrot.slane %v1177_v17, 1  ;;  %v1194_v20 = vadd.f32 %v1193_v18, %v1192_v16  ;;  %v1402_v16 = vld [vmem:[%s5931_s4 + $0x18] sm:$0xff] }
 0x24e   :  { %v1195_v21 = vrot.slane %v1194_v20, 1  ;;  %v1179_v22 = vadd.f32 %v1178_v19, %v1177_v17 }
 0x250   :  { %v1196_v23 = vadd.f32 %v1195_v21, %v1194_v20  ;;  %v4893_v20 = vpack.c.bf16 %v1402_v16, %v1401_v15 }
 0x252   :  { %v1198_v24 = vsel %vm1197_vm4, %v1179_v22, %v1196_v23  ;;  %v3925_v22 = vld [vmem:[%s5931_s4 + $0x40] sm:$0xff]  ;;  %v3926_v23 = vld [vmem:[%s5931_s4 + $0x48] sm:$0xff] }
 0x253   :  { %4436 = vmatmul.mubr.msk.f32.vlgmr.msra.gmra.mrb[16].mxu1 %vm1166_vm3, %v1198_v24  ;;  %v4905_v24 = vpack.c.bf16 %v3926_v23, %v3925_v22  ;;  %v2466_v22 = vld [vmem:[#allocation5 + $0x20] sm:$0xff]  ;;  %v2467_v23 = vld [vmem:[#allocation5 + $0x28] sm:$0xff] }
 0x254   :  { %4446 = vmatprep.mubr.msk.f32.mxu1 %vm1166_vm3, %v1316_v26  ;;  %v3928_v26 = vld [vmem:[%s5931_s4 + $0x58] sm:$0xff] }
 0x326   :  { %v1272_v27 = vpop.f32.mrb[16].mxu1 }
 0x327   :  { %v1276_v28 = vmul.f32 0.00390625, %v1272_v27  ;;  %v4437_v29 = vpop.f32.mrb[17].mxu1 }
 0x329   :  { %v1277_v30 = vmul.f32 %v1276_v28, %v1276_v28  ;;  %v1285_v34 = vrot.slane %v1276_v28, %v5614_v43 }
 0x32b   :  { %v1279_v31 = vrot.slane %v1277_v30, 7  ;;  %v1286_v41 = vsub.f32 %v5625_v51, %v1285_v34  ;;  %v1287_v45 = vsub.f32 %v5623_v50, %v1285_v34  ;;  %v1288_v46 = vsub.f32 %v1164_v63, %v1285_v34  ;;  %v3935_v30 = vld [vmem:[%s5931_s4 + $0x60] sm:$0xff] }
 0x32c   :  { %v1289_v47 = vsub.f32 %v1165_v60, %v1285_v34  ;;  %v3913_v60 = vld [vmem:[%s5931_s4 + $0x20] sm:$0xff]  ;;  %v3938_v34 = vld [vmem:[%s5931_s4 + $0x78] sm:$0xff] }
 0x32d   :  { %v1281_v32 = vsub.f32 %v1276_v28, %v1279_v31  ;;  %v4881_v0 = vpack.c.bf16 %v3914_v44, %v3913_v60  ;;  %v4909_v28 = vpack.c.bf16 %v3928_v26, %v3927_v25  ;;  %v3936_v31 = vld [vmem:[%s5931_s4 + $0x68] sm:$0xff] }
 0x32f   :  { %v1290_v33 = vadd.f32 1e-05, %v1281_v32  ;;  %v4921_v32 = vpack.c.bf16 %v3936_v31, %v3935_v30 }
 0x331   :  { %5060 = vrsqrt.f32 %v1290_v33  ;;  %v3937_v33 = vld [vmem:[%s5931_s4 + $0x70] sm:$0xff] }
 0x33b   :  { %v5061_v38 = vpop.eup %5060 }
 0x33c   :  { %v1295_v48 = vrot.slane %v5061_v38, %v5653_v35 }
 0x33e   :  { %v1296_v52 = vmul.f32 %v1295_v48, %v1286_v41  ;;  %v1297_v53 = vmul.f32 %v1295_v48, %v1287_v45  ;;  %v1298_v54 = vmul.f32 %v1295_v48, %v1288_v46  ;;  %v1299_v42 = vmul.f32 %v1295_v48, %v1289_v47  ;;  %v3945_v45 = vld [vmem:[%s5931_s4 + $0x80] sm:$0xff]  ;;  %v3946_v46 = vld [vmem:[%s5931_s4 + $0x88] sm:$0xff]  ;;  %v3947_v48 = vld [vmem:[%s5931_s4 + $0x90] sm:$0xff] }
 0x33f   :  { %v4937_v47 = vpack.c.bf16 %v3946_v46, %v3945_v45 }
 0x340   :  { %v1304_v55 = vmul.f32 %v1303_v39, %v1296_v52  ;;  %v1305_v56 = vmul.f32 %v1303_v39, %v1297_v53  ;;  %v1306_v57 = vmul.f32 %v1303_v39, %v1298_v54  ;;  %v1307_v58 = vmul.f32 %v1303_v39, %v1299_v42  ;;  %v2202_v42 = vld [vmem:[#allocation8 + $0x20] sm:$0xff] }
 0x341   :  { %v4925_v39 = vpack.c.bf16 %v3938_v34, %v3937_v33 }
 0x342   :  { %v1312_v59 = vadd.f32 %v1311_v49, %v1304_v55  ;;  %v1313_v61 = vadd.f32 %v1311_v49, %v1305_v56  ;;  %v1314_v51 = vadd.f32 %v1311_v49, %v1306_v57  ;;  %v1315_v62 = vadd.f32 %v1311_v49, %v1307_v58  ;;  %v3948_v49 = vld [vmem:[%s5931_s4 + $0x98] sm:$0xff]  ;;  %v2203_v55 = vld [vmem:[#allocation8 + $0x28] sm:$0xff]  ;;  %v2205_v58 = vld [vmem:[#allocation8 + $0x38] sm:$0xff] }
 0x343   :  { %v4941_v53 = vpack.c.bf16 %v3948_v49, %v3947_v48  ;;  %v2204_v56 = vld [vmem:[#allocation8 + $0x30] sm:$0xff]  ;;  %v4946_v57 = vpack.c.bf16 %v2203_v55, %v2202_v42  ;;  %v2311_v42 = vld [vmem:[#allocation2] sm:$0xff]  ;;  %v2386_v55 = vld [vmem:[#allocation5] sm:$0xff] }
 0x344   :  { %v4865_v50 = vpack.c.bf16 %v1313_v61, %v1312_v59  ;;  %v4869_v63 = vpack.c.bf16 %v1315_v62, %v1314_v51  ;;  %v4949_v59 = vpack.c.bf16 %v2205_v58, %v2204_v56  ;;  %v3951_v61 = vld [vmem:[%s5937_s10 + $0x4] sm:$0x7]  ;;  %v2387_v56 = vld [vmem:[#allocation5 + $0x8] sm:$0xff] }
 0x345   :  { %v2175_v51 = vrot.slane %v3951_v61, %v5614_v43  ;;  %v2302_v34 = vrot.slane %v3951_v61, %v5653_v35  ;;  %v2308_v45 = vrot.slane %v3951_v61, %v5656_v37  ;;  %v4964_v58 = vpack.c.bf16 %v2387_v56, %v2386_v55  ;;  %v2389_v61 = vld [vmem:[#allocation5 + $0x18] sm:$0xff] }
 0x346   :  { %4866 = vmatprep.subr.bf16.mxu1 %v4865_v50  ;;  %4874 = vmatprep.subr.bf16.mxu0 %v4865_v50 }
 0x347   :  { %4868 = vmatpush3.bf16.msra.mxu1 %v4865_v50  ;;  %4876 = vmatpush3.bf16.msra.mxu0 %v4865_v50 }
 0x348   :  { %4870 = vmatprep.subr.bf16.mxu1 %v4869_v63  ;;  %4878 = vmatprep.subr.bf16.mxu0 %v4869_v63 }
 0x34b   :  { %4872 = vmatpush3.bf16.msra.mxu1 %v4869_v63  ;;  %4880 = vmatpush3.bf16.msra.mxu0 %v4869_v63 }
 0x34c   :  { %4898 = vmatprep.subr.bf16.mxu0 %v4865_v50  ;;  %4882 = vmatprep.subr.bf16.mxu1 %v4881_v0 }
 0x34e   :  { %4458 = vmatmul.mubr.msk.f32.vlgmr.msra.gmra.mrb[8].mxu0 %vm1166_vm3, %v3910_v3  ;;  %4447 = vmatmul.mubr.msk.f32.vlgmr.msra.gmra.mrb[18].mxu1 %vm1166_vm3, %v1317_v4 }
 0x34f   :  { %4900 = vmatpush3.bf16.msra.mxu0 %v4865_v50  ;;  %4490 = vmatprep.mubr.msk.f32.mxu0 %vm1166_vm3, %v3921_v5 }
 0x350   :  { %4902 = vmatprep.subr.bf16.mxu0 %v4869_v63  ;;  %4884 = vmatpush3.bf16.msra.mxu1 %v4881_v0 }
 0x351   :  { %4886 = vmatprep.subr.bf16.mxu1 %v4885_v6 }
 0x353   :  { %4904 = vmatpush3.bf16.msra.mxu0 %v4869_v63 }
 0x354   :  { %4914 = vmatprep.subr.bf16.mxu0 %v4865_v50  ;;  %4888 = vmatpush3.bf16.msra.mxu1 %v4885_v6 }
 0x355   :  { %4890 = vmatprep.subr.bf16.mxu1 %v4889_v14 }
 0x356   :  { %4491 = vmatmul.mubr.msk.f32.vlgmr.msra.gmra.mrb[10].mxu0 %vm1166_vm3, %v3922_v7 }
 0x357   :  { %4916 = vmatpush3.bf16.msra.mxu0 %v4865_v50  ;;  %4512 = vmatprep.mubr.msk.f32.mxu0 %vm1166_vm3, %v3931_v8 }
 0x358   :  { %4918 = vmatprep.subr.bf16.mxu0 %v4869_v63 }
 0x35b   :  { %4920 = vmatpush3.bf16.msra.mxu0 %v4869_v63 }
 0x35c   :  { %4930 = vmatprep.subr.bf16.mxu0 %v4865_v50 }
 0x35e   :  { %4513 = vmatmul.mubr.msk.f32.vlgmr.msra.gmra.mrb[12].mxu0 %vm1166_vm3, %v3932_v9 }
 0x35f   :  { %4932 = vmatpush3.bf16.msra.mxu0 %v4865_v50  ;;  %4534 = vmatprep.mubr.msk.f32.mxu0 %vm1166_vm3, %v3941_v10 }
 0x360   :  { %4934 = vmatprep.subr.bf16.mxu0 %v4869_v63 }
 0x363   :  { %4936 = vmatpush3.bf16.msra.mxu0 %v4869_v63 }
 0x364   :  { %4945 = vmatprep.subr.bf16.mxu0 %v5192_v36 }
 0x366   :  { %4535 = vmatmul.mubr.msk.f32.vlgmr.msra.gmra.mrb[14].mxu0 %vm1166_vm3, %v3942_v11 }
 0x367   :  { %4556 = vmatprep.mubr.msk.f32.mxu0 %vm5193_vm2, %v5194_v40  ;;  %4947 = vmatpush3.bf16.msra.mxu0 %v4946_v57  ;;  %v2391_v57 = vld [vmem:[#allocation2 + $0x8] sm:$0xff] }
 0x368   :  { %4948 = vmatprep.subr.bf16.mxu0 %v5192_v36 }
 0x36b   :  { %4950 = vmatpush3.bf16.msra.mxu0 %v4949_v59  ;;  %v2388_v59 = vld [vmem:[#allocation5 + $0x10] sm:$0xff] }
 0x36c   :  { %4951 = vmatprep.subr.bf16.mxu0 %v5192_v36 }
 0x421   :  { %v4459_v17 = vpop.f32.mrb[8].mxu0  ;;  %v4448_v18 = vpop.f32.mrb[18].mxu1 }
 0x422   :  { %v1478_v19 = vpop.f32.mrb[9].mxu0  ;;  %v1390_v21 = vpop.f32.mrb[19].mxu1 }
 0x423   :  { %4468 = vmatprep.mubr.msk.f32.mxu1 %vm1166_vm3, %v1478_v19 }
 0x424   :  { %4469 = vmatmul.mubr.msk.f32.vlgmr.msra.gmra.mrb[20].mxu1 %vm1166_vm3, %v4459_v17 }
 0x425   :  { %4892 = vmatpush3.bf16.msra.mxu1 %v4889_v14  ;;  %4479 = vmatprep.mubr.msk.f32.mxu1 %vm1166_vm3, %v1390_v21 }
 0x426   :  { %4894 = vmatprep.subr.bf16.mxu1 %v4893_v20 }
 0x429   :  { %4896 = vmatpush3.bf16.msra.mxu1 %v4893_v20  ;;  %v4492_v27 = vpop.f32.mrb[10].mxu0 }
 0x42a   :  { %4906 = vmatprep.subr.bf16.mxu1 %v4905_v24  ;;  %v1729_v29 = vpop.f32.mrb[11].mxu0 }
 0x42c   :  { %4480 = vmatmul.mubr.msk.f32.vlgmr.msra.gmra.mrb[20].mxu1 %vm1166_vm3, %v4448_v18 }
 0x42d   :  { %4908 = vmatpush3.bf16.msra.mxu1 %v4905_v24  ;;  %4501 = vmatprep.mubr.msk.f32.mxu1 %vm1166_vm3, %v1729_v29  ;;  %v4958_v24 = vpack.c.bf16 %v2467_v23, %v2466_v22  ;;  %v3001_v22 = vld [vmem:[#allocation5 + $0x88] sm:$0xff] }
 0x42e   :  { %4910 = vmatprep.subr.bf16.mxu1 %v4909_v28 }
 0x431   :  { %4912 = vmatpush3.bf16.msra.mxu1 %v4909_v28  ;;  %v4514_v38 = vpop.f32.mrb[12].mxu0 }
 0x432   :  { %4922 = vmatprep.subr.bf16.mxu1 %v4921_v32  ;;  %v1901_v41 = vpop.f32.mrb[13].mxu0 }
 0x434   :  { %4502 = vmatmul.mubr.msk.f32.vlgmr.msra.gmra.mrb[20].mxu1 %vm1166_vm3, %v4492_v27 }
 0x435   :  { %4924 = vmatpush3.bf16.msra.mxu1 %v4921_v32  ;;  %4523 = vmatprep.mubr.msk.f32.mxu1 %vm1166_vm3, %v1901_v41 }
 0x436   :  { %4926 = vmatprep.subr.bf16.mxu1 %v4925_v39 }
 0x439   :  { %4928 = vmatpush3.bf16.msra.mxu1 %v4925_v39  ;;  %v4536_v52 = vpop.f32.mrb[14].mxu0 }
 0x43a   :  { %4938 = vmatprep.subr.bf16.mxu1 %v4937_v47  ;;  %v2073_v54 = vpop.f32.mrb[15].mxu0 }
 0x43c   :  { %4524 = vmatmul.mubr.msk.f32.vlgmr.msra.gmra.mrb[20].mxu1 %vm1166_vm3, %v4514_v38 }
 0x43d   :  { %4940 = vmatpush3.bf16.msra.mxu1 %v4937_v47  ;;  %4545 = vmatprep.mubr.msk.f32.mxu1 %vm1166_vm3, %v2073_v54 }
 0x43e   :  { %4942 = vmatprep.subr.bf16.mxu1 %v4941_v53 }
 0x441   :  { %4944 = vmatpush3.bf16.msra.mxu1 %v4941_v53 }
 0x442   :  { %4957 = vmatprep.subr.bf16.mxu1 %v5192_v36 }
 0x444   :  { %4546 = vmatmul.mubr.msk.f32.vlgmr.msra.gmra.mrb[20].mxu1 %vm1166_vm3, %v4536_v52 }
 0x445   :  { %4581 = vmatprep.mubr.msk.f32.mxu1 %vm5193_vm2, %v5194_v40  ;;  %4959 = vmatpush3.bf16.msra.mxu1 %v4958_v24 }
 0x446   :  { %4960 = vmatprep.subr.bf16.mxu1 %v5192_v36 }
 0x517   :  { %v4547_v62 = vpop.f32.mrb[20].mxu1 }
 0x518   :  { %v2177_v50 = vadd.f32 %v4547_v62, %v2175_v51  ;;  %v2159_v63 = vpop.f32.mrb[21].mxu1  ;;  %v2468_v62 = vld [vmem:[#allocation5 + $0x30] sm:$0xff] }
 0x519   :  { %v2176_v60 = vadd.f32 %v2175_v51, %v2159_v63  ;;  %v4967_v51 = vpack.c.bf16 %v2389_v61, %v2388_v59 }
 0x51a   :  { %v2179_v44 = vmax.f32 %v2177_v50, 0.0  ;;  %v2469_v50 = vld [vmem:[#allocation5 + $0x38] sm:$0xff] }
 0x51b   :  { %v2178_v0 = vmax.f32 %v2176_v60, 0.0  ;;  %v4961_v63 = vpack.c.bf16 %v2469_v50, %v2468_v62 }
 0x51c   :  { %v2181_v1 = vsel %vm1166_vm3, %v2179_v44, 0.0  ;;  %v2190_v2 = vmul.f32 %v2179_v44, %v2179_v44 }
 0x51d   :  { %v2180_v3 = vsel %vm1166_vm3, %v2178_v0, 0.0  ;;  %v2189_v4 = vmul.f32 %v2178_v0, %v2178_v0  ;;  %4962 = vmatpush3.bf16.msra.mxu1 %v4961_v63 }
 0x51e   :  { %v2192_v5 = vsel %vm1166_vm3, %v2190_v2, 0.0  ;;  %v2182_v6 = vadd.f32 %v2181_v1, %v2180_v3  ;;  %4969 = vmatprep.subr.bf16.mxu1 %v5192_v36  ;;  %v2617_v2 = vld [vmem:[#allocation2 + $0x10] sm:$0xff]  ;;  %v2771_v3 = vld [vmem:[#allocation2 + $0x18] sm:$0xff] }
 0x51f   :  { %v2191_v7 = vsel %vm1166_vm3, %v2189_v4, 0.0  ;;  %v2692_v4 = vld [vmem:[#allocation5 + $0x40] sm:$0xff] }
 0x520   :  { %v2183_v8 = vrot.slane %v2182_v6, 4  ;;  %v2193_v9 = vadd.f32 %v2192_v5, %v2191_v7  ;;  %v2693_v5 = vld [vmem:[#allocation5 + $0x48] sm:$0xff]  ;;  %v2694_v7 = vld [vmem:[#allocation5 + $0x50] sm:$0xff] }
 0x522   :  { %v2184_v10 = vadd.f32 %v2183_v8, %v2182_v6  ;;  %v2194_v11 = vrot.slane %v2193_v9, 4  ;;  %v4973_v6 = vpack.c.bf16 %v2693_v5, %v2692_v4  ;;  %v2695_v8 = vld [vmem:[#allocation5 + $0x58] sm:$0xff] }
 0x524   :  { %v2185_v12 = vrot.slane %v2184_v10, 2  ;;  %v2195_v13 = vadd.f32 %v2194_v11, %v2193_v9  ;;  %v4976_v9 = vpack.c.bf16 %v2695_v8, %v2694_v7  ;;  %v2847_v11 = vld [vmem:[#allocation5 + $0x68] sm:$0xff] }
 0x526   :  { %v2186_v14 = vadd.f32 %v2185_v12, %v2184_v10  ;;  %v2196_v15 = vrot.slane %v2195_v13, 2  ;;  %v2846_v10 = vld [vmem:[#allocation5 + $0x60] sm:$0xff] }
 0x527   :  { %v4982_v12 = vpack.c.bf16 %v2847_v11, %v2846_v10 }
 0x528   :  { %v2187_v16 = vrot.slane %v2186_v14, 1  ;;  %v2197_v17 = vadd.f32 %v2196_v15, %v2195_v13  ;;  %v2848_v13 = vld [vmem:[#allocation5 + $0x70] sm:$0xff] }
 0x52a   :  { %v2198_v18 = vrot.slane %v2197_v17, 1  ;;  %v2188_v19 = vadd.f32 %v2187_v16, %v2186_v14  ;;  %v2849_v14 = vld [vmem:[#allocation5 + $0x78] sm:$0xff] }
 0x52b   :  { %v4985_v15 = vpack.c.bf16 %v2849_v14, %v2848_v13 }
 0x52c   :  { %v2199_v20 = vadd.f32 %v2198_v18, %v2197_v17 }
 0x52e   :  { %v2200_v21 = vsel %vm1197_vm4, %v2188_v19, %v2199_v20 }
 0x52f   :  { %4557 = vmatmul.mubr.msk.f32.vlgmr.msra.gmra.mrb[16].mxu0 %vm1166_vm3, %v2200_v21  ;;  %v3000_v21 = vld [vmem:[#allocation5 + $0x80] sm:$0xff] }
 0x530   :  { %4563 = vmatprep.mubr.msk.f32.mxu0 %vm5193_vm2, %v5194_v40 }
 0x602   :  { %v2275_v25 = vpop.f32.mrb[16].mxu0 }
 0x603   :  { %v2279_v26 = vmul.f32 0.015625, %v2275_v25  ;;  %v4558_v27 = vpop.f32.mrb[17].mxu0  ;;  %v2925_v25 = vld [vmem:[#allocation2 + $0x20] sm:$0xff] }
 0x605   :  { %v2280_v28 = vmul.f32 %v2279_v26, %v2279_v26  ;;  %v2288_v32 = vrot.slane %v2279_v26, %v5614_v43 }
 0x607   :  { %v2282_v29 = vrot.slane %v2280_v28, 7  ;;  %v2289_v38 = vsub.f32 %v2178_v0, %v2288_v32  ;;  %v2290_v39 = vsub.f32 %v2179_v44, %v2288_v32 }
 0x609   :  { %v2284_v30 = vsub.f32 %v2279_v26, %v2282_v29  ;;  %v4991_v26 = vpack.c.bf16 %v3001_v22, %v3000_v21  ;;  %v3002_v29 = vld [vmem:[#allocation5 + $0x90] sm:$0xff] }
 0x60b   :  { %v2291_v31 = vadd.f32 1e-05, %v2284_v30  ;;  %v3003_v30 = vld [vmem:[#allocation5 + $0x98] sm:$0xff] }
 0x60d   :  { %5062 = vrsqrt.f32 %v2291_v31  ;;  %v4994_v31 = vpack.c.bf16 %v3003_v30, %v3002_v29  ;;  %v3208_v30 = vld [vmem:[%s5934_s7] sm:$0xf] }
 0x617   :  { %v5063_v33 = vpop.eup %5062 }
 0x618   :  { %v2296_v41 = vrot.slane %v5063_v33, %v5653_v35 }
 0x61a   :  { %v2297_v46 = vmul.f32 %v2296_v41, %v2289_v38  ;;  %v2298_v47 = vmul.f32 %v2296_v41, %v2290_v39 }
 0x61c   :  { %v2303_v48 = vmul.f32 %v2302_v34, %v2297_v46  ;;  %v2304_v49 = vmul.f32 %v2302_v34, %v2298_v47  ;;  %v3103_v47 = vld [vmem:[#allocation8 + $0x40] sm:$0xff] }
 0x61e   :  { %v2309_v52 = vadd.f32 %v2308_v45, %v2303_v48  ;;  %v2310_v53 = vadd.f32 %v2308_v45, %v2304_v49  ;;  %v3104_v48 = vld [vmem:[#allocation8 + $0x48] sm:$0xff]  ;;  %v3105_v49 = vld [vmem:[#allocation8 + $0x50] sm:$0xff] }
 0x620   :  { %v5792_v54 = vpack.c.bf16 %v2310_v53, %v2309_v52  ;;  %v4997_v52 = vpack.c.bf16 %v3104_v48, %v3103_v47  ;;  %v3106_v53 = vld [vmem:[#allocation8 + $0x58] sm:$0xff] }
 0x622   :  { %4953 = vmatpush3.bf16.msra.mxu0 %v5792_v54 }
 0x623   :  { %4954 = vmatprep.subr.bf16.mxu0 %v5192_v36 }
 0x625   :  { %4564 = vmatmul.mubr.msk.f32.vlgmr.msra.gmra.mrb[18].mxu0 %vm2312_vm5, %v2311_v42  ;;  %v3963_v42 = vld [vmem:[%s5937_s10 + $0x8] sm:$0x7] }
 0x626   :  { %4956 = vmatpush3.bf16.msra.mxu0 %v5792_v54  ;;  %4570 = vmatprep.mubr.msk.f32.mxu0 %vm5193_vm2, %v5194_v40  ;;  %v3083_v55 = vrot.slane %v3963_v42, %v5614_v43  ;;  %v3206_v22 = vrot.slane %v3963_v42, %v5656_v37 }
 0x627   :  { %4963 = vmatprep.subr.bf16.mxu0 %v5192_v36 }
 0x629   :  { %4571 = vmatmul.mubr.msk.f32.vlgmr.msra.gmra.mrb[20].mxu0 %vm2312_vm5, %v2391_v57 }
 0x62a   :  { %4965 = vmatpush3.bf16.msra.mxu0 %v4964_v58  ;;  %4592 = vmatprep.mubr.msk.f32.mxu0 %vm5193_vm2, %v5194_v40 }
 0x62b   :  { %4966 = vmatprep.subr.bf16.mxu0 %v5192_v36 }
 0x62e   :  { %4968 = vmatpush3.bf16.msra.mxu0 %v4967_v51 }
 0x62f   :  { %4972 = vmatprep.subr.bf16.mxu0 %v5192_v36 }
 0x6f8   :  { %v2382_v60 = vpop.f32.mrb[18].mxu0 }
 0x6f9   :  { %v4565_v44 = vpop.f32.mrb[19].mxu0  ;;  %4593 = vmatmul.mubr.msk.f32.vlgmr.msra.gmra.mrb[22].mxu0 %vm1166_vm3, %v2382_v60 }
 0x6fa   :  { %4610 = vmatprep.mubr.msk.f32.mxu0 %vm5193_vm2, %v5194_v40  ;;  %4974 = vmatpush3.bf16.msra.mxu0 %v4973_v6 }
 0x6fb   :  { %4975 = vmatprep.subr.bf16.mxu0 %v5192_v36 }
 0x6fc   :  { %v2461_v0 = vpop.f32.mrb[20].mxu0 }
 0x6fd   :  { %v4572_v1 = vpop.f32.mrb[21].mxu0  ;;  %4582 = vmatmul.mubr.msk.f32.vlgmr.msra.gmra.mrb[22].mxu1 %vm1166_vm3, %v2461_v0 }
 0x6fe   :  { %4971 = vmatpush3.bf16.msra.mxu1 %v5792_v54  ;;  %4599 = vmatprep.mubr.msk.f32.mxu1 %vm5193_vm2, %v5194_v40 }
 0x6ff   :  { %4978 = vmatprep.subr.bf16.mxu1 %v5192_v36  ;;  %4977 = vmatpush3.bf16.msra.mxu0 %v4976_v9 }
 0x700   :  { %4987 = vmatprep.subr.bf16.mxu0 %v5192_v36 }
 0x701   :  { %4600 = vmatmul.mubr.msk.f32.vlgmr.msra.gmra.mrb[24].mxu1 %vm2312_vm5, %v2617_v2 }
 0x702   :  { %4980 = vmatpush3.bf16.msra.mxu1 %v5792_v54  ;;  %4617 = vmatprep.mubr.msk.f32.mxu1 %vm5193_vm2, %v5194_v40 }
 0x703   :  { %4981 = vmatprep.subr.bf16.mxu1 %v5192_v36 }
 0x705   :  { %4618 = vmatmul.mubr.msk.f32.vlgmr.msra.gmra.mrb[26].mxu1 %vm2312_vm5, %v2771_v3 }
 0x706   :  { %4628 = vmatprep.mubr.msk.f32.mxu1 %vm5193_vm2, %v5194_v40  ;;  %4983 = vmatpush3.bf16.msra.mxu1 %v4982_v12 }
 0x707   :  { %4984 = vmatprep.subr.bf16.mxu1 %v5192_v36 }
 0x70a   :  { %4986 = vmatpush3.bf16.msra.mxu1 %v4985_v15 }
 0x70b   :  { %4996 = vmatprep.subr.bf16.mxu1 %v5192_v36 }
 0x7cc   :  { %v2612_v16 = vpop.f32.mrb[22].mxu0 }
 0x7cd   :  { %v4594_v17 = vpop.f32.mrb[23].mxu0 }
 0x7d0   :  { %v2539_v18 = vpop.f32.mrb[22].mxu1 }
 0x7d1   :  { %v2613_v19 = vadd.f32 %v2612_v16, %v2539_v18  ;;  %v4583_v20 = vpop.f32.mrb[23].mxu1 }
 0x7d4   :  { %v2687_v23 = vpop.f32.mrb[24].mxu1 }
 0x7d5   :  { %v4601_v24 = vpop.f32.mrb[25].mxu1  ;;  %4611 = vmatmul.mubr.msk.f32.vlgmr.msra.gmra.mrb[24].mxu0 %vm1166_vm3, %v2687_v23 }
 0x7d6   :  { %4989 = vmatpush3.bf16.msra.mxu0 %v5792_v54  ;;  %4635 = vmatprep.mubr.msk.f32.mxu0 %vm5193_vm2, %v5194_v40  ;;  %v5000_v54 = vpack.c.bf16 %v3106_v53, %v3105_v49  ;;  %v3363_v24 = vld [vmem:[#allocation7 + $0x20] sm:$0xff] }
 0x7d7   :  { %4990 = vmatprep.subr.bf16.mxu0 %v5192_v36  ;;  %v3539_v53 = vld [vmem:[#allocation8 + $0x60] sm:$0xff] }
 0x7d8   :  { %v2841_v27 = vpop.f32.mrb[26].mxu1 }
 0x7d9   :  { %4629 = vmatmul.mubr.msk.f32.vlgmr.msra.gmra.mrb[28].mxu1 %vm1166_vm3, %v2841_v27  ;;  %4636 = vmatmul.mubr.msk.f32.vlgmr.msra.gmra.mrb[26].mxu0 %vm2312_vm5, %v2925_v25  ;;  %v4619_v28 = vpop.f32.mrb[27].mxu1  ;;  %v3283_v27 = vld [vmem:[#allocation7] sm:$0xff] }
 0x7da   :  { %4992 = vmatpush3.bf16.msra.mxu0 %v4991_v26  ;;  %4646 = vmatprep.mubr.msk.f32.mxu0 %vm5193_vm2, %v5194_v40  ;;  %v3364_v26 = vld [vmem:[#allocation7 + $0x28] sm:$0xff] }
 0x7db   :  { %4993 = vmatprep.subr.bf16.mxu0 %v5192_v36  ;;  %4657 = vmatprep.mubr.msk.f32.mxu1 %vm5193_vm2, %v5194_v40  ;;  %v3284_v28 = vld [vmem:[#allocation7 + $0x8] sm:$0xff] }
 0x7dc   :  { %4998 = vmatpush3.bf16.msra.mxu1 %v4997_v52 }
 0x7dd   :  { %4999 = vmatprep.subr.bf16.mxu1 %v5192_v36 }
 0x7de   :  { %4995 = vmatpush3.bf16.msra.mxu0 %v4994_v31  ;;  %v3966_v31 = vld [vmem:[%s5934_s7 + $0x4] sm:$0xf] }
 0x7df   :  { %4660 = vmatprep.subr.mxu0 %v5194_v40 }
 0x7e0   :  { %5001 = vmatpush3.bf16.msra.mxu1 %v5000_v54  ;;  %v3540_v54 = vld [vmem:[#allocation8 + $0x68] sm:$0xff] }
 0x7e1   :  { %4665 = vmatprep.subr.mxu1 %v5194_v40 }
 0x8a8   :  { %v2765_v32 = vpop.f32.mrb[24].mxu0 }
 0x8a9   :  { %v2769_v33 = vadd.f32 %v2765_v32, %v2613_v19  ;;  %v4612_v34 = vpop.f32.mrb[25].mxu0  ;;  %v3201_v19 = vrot.slane %v3963_v42, %v5653_v35  ;;  %v5003_v32 = vpack.c.bf16 %v3364_v26, %v3363_v24  ;;  %v3541_v42 = vld [vmem:[#allocation8 + $0x70] sm:$0xff] }
 0x8aa   :  { %v3365_v34 = vld [vmem:[#allocation7 + $0x30] sm:$0xff] }
 0x8ac   :  { %v2919_v38 = vpop.f32.mrb[28].mxu1  ;;  %v2995_v39 = vpop.f32.mrb[26].mxu0 }
 0x8ad   :  { %v2923_v41 = vadd.f32 %v2919_v38, %v2769_v33  ;;  %v4637_v45 = vpop.f32.mrb[27].mxu0  ;;  %4647 = vmatmul.mubr.msk.f32.vlgmr.msra.gmra.mrb[28].mxu0 %vm1166_vm3, %v2995_v39  ;;  %v4630_v46 = vpop.f32.mrb[29].mxu1  ;;  %v5009_v33 = vpack.c.bf16 %v3284_v28, %v3283_v27  ;;  %v3366_v38 = vld [vmem:[#allocation7 + $0x38] sm:$0xff]  ;;  %v3285_v39 = vld [vmem:[#allocation7 + $0x10] sm:$0xff] }
 0x8ae   :  { %4662 = vmatprep.mubr.msk.f32.mxu0 %vm5193_vm2, %v5194_v40  ;;  %v5006_v45 = vpack.c.bf16 %v3366_v38, %v3365_v34  ;;  %v3726_v34 = vld [vmem:[%s5939_s12 + $0x18] sm:$0xff] }
 0x980   :  { %v3073_v56 = vpop.f32.mrb[28].mxu0 }
 0x981   :  { %v3077_v57 = vadd.f32 %v3073_v56, %v2923_v41  ;;  %v4648_v58 = vpop.f32.mrb[29].mxu0  ;;  %v3286_v41 = vld [vmem:[#allocation7 + $0x18] sm:$0xff] }
 0x982   :  { %v5012_v46 = vpack.c.bf16 %v3286_v41, %v3285_v39  ;;  %v3542_v56 = vld [vmem:[#allocation8 + $0x78] sm:$0xff]  ;;  %v3970_v58 = vld [vmem:[%s5937_s10 + $0xc] sm:$0x7] }
 0x983   :  { %v3084_v59 = vadd.f32 %v3083_v55, %v3077_v57  ;;  %v5015_v55 = vpack.c.bf16 %v3540_v54, %v3539_v53  ;;  %v5018_v57 = vpack.c.bf16 %v3542_v56, %v3541_v42  ;;  %v3642_v28 = vrot.slane %v3970_v58, %v5656_v37  ;;  %v3725_v37 = vld [vmem:[%s5939_s12 + $0x10] sm:$0xff] }
 0x984   :  { %v5024_v38 = vpack.c.bf16 %v3726_v34, %v3725_v37 }
 0x985   :  { %v3085_v61 = vmax.f32 %v3084_v59, 0.0  ;;  %v3518_v59 = vrot.slane %v3970_v58, %v5614_v43 }
 0x987   :  { %v3086_v51 = vsel %vm1166_vm3, %v3085_v61, 0.0  ;;  %v3093_v62 = vmul.f32 %v3085_v61, %v3085_v61 }
 0x988   :  { %v3087_v50 = vrot.slane %v3086_v51, 4 }
 0x989   :  { %v3094_v63 = vsel %vm1166_vm3, %v3093_v62, 0.0 }
 0x98a   :  { %v3088_v60 = vadd.f32 %v3087_v50, %v3086_v51  ;;  %v3095_v44 = vrot.slane %v3094_v63, 4 }
 0x98c   :  { %v3089_v0 = vrot.slane %v3088_v60, 2  ;;  %v3096_v1 = vadd.f32 %v3095_v44, %v3094_v63 }
 0x98e   :  { %v3090_v2 = vadd.f32 %v3089_v0, %v3088_v60  ;;  %v3097_v3 = vrot.slane %v3096_v1, 2 }
 0x990   :  { %v3091_v4 = vrot.slane %v3090_v2, 1  ;;  %v3098_v5 = vadd.f32 %v3097_v3, %v3096_v1 }
 0x992   :  { %v3099_v6 = vrot.slane %v3098_v5, 1  ;;  %v3092_v7 = vadd.f32 %v3091_v4, %v3090_v2 }
 0x994   :  { %v3100_v8 = vadd.f32 %v3099_v6, %v3098_v5 }
 0x996   :  { %v3101_v9 = vsel %vm1197_vm4, %v3092_v7, %v3100_v8 }
 0x997   :  { %4658 = vmatmul.mubr.msk.f32.vlgmr.msra.gmra.mrb[30].mxu1 %vm1166_vm3, %v3101_v9 }
 0x998   :  { %4667 = vmatprep.mubr.msk.f32.mxu1 %vm5193_vm2, %v5194_v40 }
 0xa6a   :  { %v3176_v10 = vpop.f32.mrb[30].mxu1 }
 0xa6b   :  { %v3180_v11 = vmul.f32 0.0625, %v3176_v10  ;;  %v4659_v12 = vpop.f32.mrb[31].mxu1 }
 0xa6d   :  { %v3181_v13 = vmul.f32 %v3180_v11, %v3180_v11  ;;  %v3189_v17 = vrot.slane %v3180_v11, %v5614_v43 }
 0xa6f   :  { %v3183_v14 = vrot.slane %v3181_v13, 7  ;;  %v3190_v20 = vsub.f32 %v3085_v61, %v3189_v17 }
 0xa71   :  { %v3185_v15 = vsub.f32 %v3180_v11, %v3183_v14 }
 0xa73   :  { %v3191_v16 = vadd.f32 1e-05, %v3185_v15 }
 0xa75   :  { %5064 = vrsqrt.f32 %v3191_v16 }
 0xa7f   :  { %v5065_v18 = vpop.eup %5064 }
 0xa80   :  { %v3196_v21 = vrot.slane %v5065_v18, %v5653_v35 }
 0xa82   :  { %v3197_v23 = vmul.f32 %v3196_v21, %v3190_v20 }
 0xa84   :  { %v3202_v25 = vmul.f32 %v3201_v19, %v3197_v23 }
 0xa86   :  { %v3207_v29 = vadd.f32 %v3206_v22, %v3202_v25  ;;  %v3637_v25 = vrot.slane %v3970_v58, %v5653_v35 }
 0xa88   :  { %4661 = vmatpush3.msra.mxu0 %v3207_v29  ;;  %4666 = vmatpush3.msra.mxu1 %v3207_v29 }
 0xa89   :  { %4663 = vmatmul.mubr.msk.f32.vlgmr.msra.gmra.mrb[30].mxu0 %vm3209_vm6, %v3208_v30  ;;  %4668 = vmatmul.mubr.msk.f32.vlgmr.msra.gmra.mrb[32].mxu1 %vm3209_vm6, %v3966_v31  ;;  %v3723_v30 = vld [vmem:[%s5939_s12] sm:$0xff]  ;;  %v3724_v31 = vld [vmem:[%s5939_s12 + $0x8] sm:$0xff]  ;;  %s5195_s12 = smov [#allocation10]  }
 0xa8a   :  { %5002 = vmatprep.subr.bf16.mxu0 %v5192_v36  ;;  %5008 = vmatprep.subr.bf16.mxu1 %v5192_v36  ;;  %s3815_s17 = sshll.u32 %s5195_s12, 4  ;;  %s3816_s17 = int_to_ptr.vmem [resolvable:$true] %s3815_s17 }
 0xa8b   :  { %5004 = vmatpush3.bf16.msra.mxu0 %v5003_v32  ;;  %5010 = vmatpush3.bf16.msra.mxu1 %v5009_v33  ;;  %v3644_v33 = vld [vmem:[%s5938_s11] sm:$0xf]  ;;  %s5156_s18 = scalar_lea.vmem %s3816_s17, 64  ;;  %p5161_p5 = scmp.lt.s32.totalorder %s3816_s17, %s3816_s17 }
 0xa8c   :  { %5005 = vmatprep.subr.bf16.mxu0 %v5192_v36  ;;  %5011 = vmatprep.subr.bf16.mxu1 %v5192_v36  ;;  %p5157_p4 = scmp.ne.s32.totalorder %s3816_s17, %s5156_s18  ;;  %p5162_p6 = scmp.lt.s32.totalorder %s5156_s18, %s5156_s18 }
 0xa8d   :  { %4678 = vmatprep.mubr.msk.f32.mxu0 %vm5193_vm2, %v5194_v40  ;;  %4689 = vmatprep.mubr.msk.f32.mxu1 %vm5193_vm2, %v5194_v40 }
 0xa8e   :  { %p5163_p7 = por %p5162_p6, %p5161_p5 }
 0xa8f   :  { %5007 = vmatpush3.bf16.msra.mxu0 %v5006_v45  ;;  %5013 = vmatpush3.bf16.msra.mxu1 %v5012_v46  ;;  %v3974_v45 = vld [vmem:[%s5940_s13] ss:$0 sm:$0xff] }
 0xa90   :  { %5014 = vmatprep.subr.bf16.mxu0 %v5192_v36  ;;  %4703 = vmatprep.subr.mxu1 %v5194_v40  ;;  %p5164_p8 = pnand %p5163_p7, %p5157_p4 }
 0xb5c   :  { %v3279_v47 = vpop.f32.mrb[30].mxu0  ;;  %v3358_v48 = vpop.f32.mrb[32].mxu1 }
 0xb5d   :  { %v4664_v49 = vpop.f32.mrb[31].mxu0  ;;  %v4669_v52 = vpop.f32.mrb[33].mxu1  ;;  %4679 = vmatmul.mubr.msk.f32.vlgmr.msra.gmra.mrb[32].mxu0 %vm1166_vm3, %v3358_v48  ;;  %4690 = vmatmul.mubr.msk.f32.vlgmr.msra.gmra.mrb[34].mxu1 %vm1166_vm3, %v3279_v47 }
 0xb5e   :  { %4700 = vmatprep.mubr.msk.f32.mxu0 %vm5193_vm2, %v5194_v40  ;;  %4705 = vmatprep.mubr.msk.f32.mxu1 %vm5193_vm2, %v5194_v40 }
 0xb5f   :  { %5016 = vmatpush3.bf16.msra.mxu0 %v5015_v55 }
 0xb60   :  { %5017 = vmatprep.subr.bf16.mxu0 %v5192_v36 }
 0xb63   :  { %5019 = vmatpush3.bf16.msra.mxu0 %v5018_v57 }
 0xc30   :  { %v3436_v61 = vpop.f32.mrb[32].mxu0  ;;  %v3509_v51 = vpop.f32.mrb[34].mxu1 }
 0xc31   :  { %v3510_v62 = vadd.f32 %v3509_v51, %v3436_v61  ;;  %v4680_v50 = vpop.f32.mrb[33].mxu0  ;;  %v4691_v63 = vpop.f32.mrb[35].mxu1 }
 0xc33   :  { %v3519_v60 = vadd.f32 %v3518_v59, %v3510_v62 }
 0xc35   :  { %v3520_v44 = vmax.f32 %v3519_v60, 0.0 }
 0xc37   :  { %v3522_v0 = vsel %vm3521_vm7, %v3520_v44, 0.0  ;;  %v3529_v1 = vmul.f32 %v3520_v44, %v3520_v44 }
 0xc38   :  { %v3523_v2 = vrot.slane %v3522_v0, 4 }
 0xc39   :  { %v3530_v3 = vsel %vm3521_vm7, %v3529_v1, 0.0 }
 0xc3a   :  { %v3524_v4 = vadd.f32 %v3523_v2, %v3522_v0  ;;  %v3531_v5 = vrot.slane %v3530_v3, 4 }
 0xc3c   :  { %v3525_v6 = vrot.slane %v3524_v4, 2  ;;  %v3532_v7 = vadd.f32 %v3531_v5, %v3530_v3 }
 0xc3e   :  { %v3526_v8 = vadd.f32 %v3525_v6, %v3524_v4  ;;  %v3533_v9 = vrot.slane %v3532_v7, 2 }
 0xc40   :  { %v3527_v10 = vrot.slane %v3526_v8, 1  ;;  %v3534_v11 = vadd.f32 %v3533_v9, %v3532_v7 }
 0xc42   :  { %v3535_v12 = vrot.slane %v3534_v11, 1  ;;  %v3528_v13 = vadd.f32 %v3527_v10, %v3526_v8 }
 0xc44   :  { %v3536_v14 = vadd.f32 %v3535_v12, %v3534_v11 }
 0xc46   :  { %v3537_v15 = vsel %vm1197_vm4, %v3528_v13, %v3536_v14 }
 0xc47   :  { %4701 = vmatmul.mubr.msk.f32.vlgmr.msra.gmra.mrb[34].mxu0 %vm1166_vm3, %v3537_v15 }
 0xd1a   :  { %v3612_v16 = vpop.f32.mrb[34].mxu0 }
 0xd1b   :  { %v3616_v17 = vmul.f32 0.25, %v3612_v16  ;;  %v4702_v18 = vpop.f32.mrb[35].mxu0 }
 0xd1d   :  { %v3617_v19 = vmul.f32 %v3616_v17, %v3616_v17  ;;  %v3625_v23 = vrot.slane %v3616_v17, %v5614_v43 }
 0xd1f   :  { %v3619_v20 = vrot.slane %v3617_v19, 7  ;;  %v3626_v26 = vsub.f32 %v3520_v44, %v3625_v23 }
 0xd21   :  { %v3621_v21 = vsub.f32 %v3616_v17, %v3619_v20 }
 0xd23   :  { %v3627_v22 = vadd.f32 1e-05, %v3621_v21 }
 0xd25   :  { %5066 = vrsqrt.f32 %v3627_v22 }
 0xd2f   :  { %v5067_v24 = vpop.eup %5066 }
 0xd30   :  { %v3632_v27 = vrot.slane %v5067_v24, %v5653_v35  ;;  %v5021_v35 = vpack.c.bf16 %v3724_v31, %v3723_v30 }
 0xd32   :  { %v3633_v29 = vmul.f32 %v3632_v27, %v3626_v26 }
 0xd34   :  { %v3638_v32 = vmul.f32 %v3637_v25, %v3633_v29 }
 0xd36   :  { %v3643_v43 = vadd.f32 %v3642_v28, %v3638_v32 }
 0xd38   :  { %4704 = vmatpush3.msk.msra.mxu1 %vm3649_vm8, %v3643_v43 }
 0xd39   :  { %4706 = vmatmul.mubr.msk.f32.vlgmr.msra.gmra.mrb[36].mxu1 %vm3645_vm9, %v3644_v33  ;;  %5020 = vmatprep.subr.bf16.mxu1 %v5192_v36 }
 0xd3a   :  { %5022 = vmatpush3.bf16.msra.mxu1 %v5021_v35  ;;  %4716 = vmatprep.mubr.msk.f32.mxu1 %vm5193_vm2, %v5194_v40 }
 0xd3b   :  { %5023 = vmatprep.subr.bf16.mxu1 %v5192_v36 }
 0xd3e   :  { %5025 = vmatpush3.bf16.msra.mxu1 %v5024_v38 }
 0xe0c   :  { %v3719_v39 = vpop.f32.mrb[36].mxu1 }
 0xe0d   :  { %v4707_v41 = vpop.f32.mrb[37].mxu1  ;;  %4717 = vmatmul.mubr.msk.f32.vlgmr.msra.gmra.mrb[38].mxu1 %vm1166_vm3, %v3719_v39 }
 0xee0   :  { %v3803_v46 = vpop.f32.mrb[38].mxu1 }
 0xee1   :  { %v3804_v47 = vadd.f32 %v3974_v45, %v3803_v46  ;;  %v4718_v48 = vpop.f32.mrb[39].mxu1 }
 0xee3   :  { %3808 = vst.msk [vmem:[#allocation10] sm:$0xf] %vm3807_vm10, %v3804_v47 }
 0xee4   :  { %5167 = shalt.err (!%p5164_p8)
}
 0xee5   :  { %s5168_s3 = scalar_lea.hbm %s5941_s14, 64 }
 0xee6   :  { %p5169_p9 = scmp.ne.s32.totalorder %s5941_s14, %s5168_s3  ;;  %p5172_p10 = scmp.lt.u32.totalorder %s5168_s3, %s5941_s14 }
 0xee8   :  { %p5174_p11 = pnand %p5172_p10, %p5169_p9 }
 0xeea   :  { %5177 = shalt.err (!%p5174_p11)
}
 0xeeb   :  { %3818 = dma.vmem_to_hbm [thread:$0]  %s3816_s17, 64, %s5941_s14, [#allocation4]  }
 0xeec   :  { %5184 = dma.done.wait [#allocation4], 64  }
 0xeed   :  { %5185 = vsyncadd [#allocation4], 4294967232 }
 0xeee   :  { %3822 = vsyncpa [#allocation3], 1 }
 0xeef   :  { %3823 = vsyncpa [#allocation6], 1 }
 0xef0   :  { %3824 = vsyncpa [#allocation9], 1 }
 0xef1   :  { %3825 = vsyncpa [#allocation4], 1 }

</bundles_post_ra>
